<compile_context>
chip_gen: v5e
topology: v5e:2x2
jax: 0.10.0
libtpu: 0.0.40
codegen_flags: <defaults>
</compile_context>

<pallas_src>
import jax
import jax.numpy as jnp
from jax.experimental import pallas as pl
from jax.experimental.pallas import tpu as pltpu

NUM_INPUTS = 784
NUM_HIDDEN = 1000
NUM_OUTPUTS = 10
BETA1 = 0.95      # lif1 beta (scalar, clamped to [0,1] -> 0.95)
BETA2 = 0.95      # lif2 beta
THRESH1 = 1.0
THRESH2 = 1.0

LANE = 128


def _round_up(n, m):
    return -(-n // m) * m


def _pick_block(n, target):
    """Use `target` if it evenly tiles n, else fall back to the full dimension."""
    return target if (n >= target and n % target == 0) else n


# ---------------------------------------------------------------------------
# Kernel A: time-batched layer-1 input projection  pre1 = x2d @ W1 + b1
#   x2d : (T*B, D) bf16    W1 : (D, Hp) bf16    b1 : (1, Hp) f32
#   out : (T*B, Hp) f32
# ---------------------------------------------------------------------------
def _proj_kernel(x_ref, w1_ref, b1_ref, out_ref):
    out_ref[...] = (
        jnp.dot(x_ref[...], w1_ref[...], preferred_element_type=jnp.float32)
        + b1_ref[...]
    )


# ---------------------------------------------------------------------------
# Kernel B: leaky-relu recurrence over time (whole time loop in one invocation)
#   pre1 : (T, bb, Hp) f32   W2 : (Hp, Op) bf16   b2 : (1, Op) f32
#   out  : (T, bb, Op) f32   (binary spikes; padded lanes are all zero)
# ---------------------------------------------------------------------------
def _recurrence_kernel(pre1_ref, w2_ref, b2_ref, out_ref):
    n_steps, bb, hp = pre1_ref.shape
    op = w2_ref.shape[1]

    # Hoisted loop-invariant bias broadcast (JAX does not CSE broadcast_in_dim).
    b2_full = jnp.broadcast_to(b2_ref[...], (bb, op))

    def step(t, carry):
        h1, h2 = carry
        # Layer 1: membrane update only (input projection already hoisted).
        mem1 = jnp.maximum(pre1_ref[t] + BETA1 * h1, 0.0)
        spk1 = (mem1 > THRESH1).astype(jnp.bfloat16)        # 0/1, exact in bf16
        # Layer 2: small (bb, Hp) x (Hp, Op) MXU matmul + membrane update.
        pre2 = jnp.dot(spk1, w2_ref[...], preferred_element_type=jnp.float32)
        mem2 = jnp.maximum(pre2 + b2_full + BETA2 * h2, 0.0)
        out_ref[t] = (mem2 > THRESH2).astype(jnp.float32)   # lane-dense store
        return (mem1, mem2)

    h1_0 = jnp.zeros((bb, hp), jnp.float32)
    h2_0 = jnp.zeros((bb, op), jnp.float32)
    jax.lax.fori_loop(0, n_steps, step, (h1_0, h2_0), unroll=n_steps <= 32)


def net_forward(x, w1t, b1, w2t, b2):
    """x: (T, B, 28, 28) -> spk2: (T, B, 10). Mirrors Net.forward."""
    T, B = x.shape[0], x.shape[1]
    D, H = w1t.shape
    O = w2t.shape[1]
    Hp = _round_up(H, LANE)      # 1000 -> 1024
    Op = _round_up(O, LANE)      # 10   -> 128

    xf = x.reshape(T, B, -1)                                   # == x.flatten(2)
    assert xf.shape[-1] == D
    x2d = xf.reshape(T * B, D).astype(jnp.bfloat16)            # row index t*B+b

    # Zero-padded bf16 weights: padded lanes stay exactly 0 through relu/threshold.
    w1p = jnp.zeros((D, Hp), jnp.bfloat16).at[:, :H].set(w1t.astype(jnp.bfloat16))
    b1p = jnp.zeros((1, Hp), jnp.float32).at[:, :H].set(b1.astype(jnp.float32))
    w2p = jnp.zeros((Hp, Op), jnp.bfloat16).at[:H, :O].set(w2t.astype(jnp.bfloat16))
    b2p = jnp.zeros((1, Op), jnp.float32).at[:, :O].set(b2.astype(jnp.float32))

    # ---- Kernel A: one big MXU matmul over all T*B rows -------------------
    TB = T * B
    bm = _pick_block(TB, 256)
    pre1 = pl.pallas_call(
        _proj_kernel,
        out_shape=jax.ShapeDtypeStruct((TB, Hp), jnp.float32),
        grid=(TB // bm,),
        in_specs=[
            pl.BlockSpec((bm, D), lambda i: (i, 0)),
            pl.BlockSpec((D, Hp), lambda i: (0, 0)),           # W1 resident
            pl.BlockSpec((1, Hp), lambda i: (0, 0)),
        ],
        out_specs=pl.BlockSpec((bm, Hp), lambda i: (i, 0)),
        compiler_params=pltpu.CompilerParams(
            dimension_semantics=("parallel",),
        ),
    )(x2d, w1p, b1p)
    pre1 = pre1.reshape(T, B, Hp)

    # ---- Kernel B: recurrence; batch blocks run in parallel ----------------
    bb = _pick_block(B, 8)
    out = pl.pallas_call(
        _recurrence_kernel,
        out_shape=jax.ShapeDtypeStruct((T, B, Op), jnp.float32),
        grid=(B // bb,),
        in_specs=[
            pl.BlockSpec((T, bb, Hp), lambda i: (0, i, 0)),
            pl.BlockSpec((Hp, Op), lambda i: (0, 0)),          # W2 resident
            pl.BlockSpec((1, Op), lambda i: (0, 0)),
        ],
        out_specs=pl.BlockSpec((T, bb, Op), lambda i: (0, i, 0)),
        compiler_params=pltpu.CompilerParams(
            dimension_semantics=("parallel",),
        ),
    )(pre1, w2p, b2p)

    return out[:, :, :O]


def ref_forward(x, w1t, b1, w2t, b2):
    """Pure-JAX reference (lax.scan over time), bf16-consistent matmul inputs."""
    T, B = x.shape[0], x.shape[1]
    xf = x.reshape(T, B, -1).astype(jnp.bfloat16).astype(jnp.float32)
    w1 = w1t.astype(jnp.bfloat16).astype(jnp.float32)
    w2 = w2t.astype(jnp.bfloat16).astype(jnp.float32)
    H, O = w1t.shape[1], w2t.shape[1]

    def step(carry, x_t):
        h1, h2 = carry
        m1 = jnp.maximum(x_t @ w1 + b1 + BETA1 * h1, 0.0)
        s1 = (m1 > THRESH1).astype(jnp.float32)
        m2 = jnp.maximum(s1 @ w2 + b2 + BETA2 * h2, 0.0)
        s2 = (m2 > THRESH2).astype(jnp.float32)
        return (m1, m2), s2

    init = (jnp.zeros((B, H), jnp.float32), jnp.zeros((B, O), jnp.float32))
    _, spk = jax.lax.scan(step, init, xf)
    return spk


def init_params(key):
    """Deterministic nn.RNN-style init: U(-1/sqrt(hidden), 1/sqrt(hidden))."""
    k1, k2, k3, k4, k5, k6 = jax.random.split(key, 6)
    s1 = 1.0 / jnp.sqrt(NUM_HIDDEN)
    s2 = 1.0 / jnp.sqrt(NUM_OUTPUTS)
    # W_ih stored transposed so the kernels compute x @ W^T directly.
    w1t = jax.random.uniform(k1, (NUM_INPUTS, NUM_HIDDEN), jnp.float32, -s1, s1)
    b1_ih = jax.random.uniform(k2, (1, NUM_HIDDEN), jnp.float32, -s1, s1)
    b1_hh = jax.random.uniform(k3, (1, NUM_HIDDEN), jnp.float32, -s1, s1)
    w2t = jax.random.uniform(k4, (NUM_HIDDEN, NUM_OUTPUTS), jnp.float32, -s2, s2)
    b2_ih = jax.random.uniform(k5, (1, NUM_OUTPUTS), jnp.float32, -s2, s2)
    b2_hh = jax.random.uniform(k6, (1, NUM_OUTPUTS), jnp.float32, -s2, s2)
    # weight_hh is identity-masked diag(beta) in LeakyParallel -> folded into
    # the beta * mem recurrence inside the kernel.
    return w1t, b1_ih + b1_hh, w2t, b2_ih + b2_hh


if __name__ == "__main__":
    key = jax.random.PRNGKey(0)
    kx, kp = jax.random.split(key)

    T, B = 8, 2                                                # small demo shapes
    x = jax.random.uniform(kx, (T, B, 28, 28), jnp.float32)    # MNIST-like pixels

    w1t, b1, w2t, b2 = init_params(kp)

    spk2 = jax.block_until_ready(net_forward(x, w1t, b1, w2t, b2))
    ref = jax.block_until_ready(ref_forward(x, w1t, b1, w2t, b2))

    assert spk2.shape == (T, B, NUM_OUTPUTS), spk2.shape
    assert spk2.dtype == jnp.float32
    assert jnp.allclose(spk2, ref, atol=1e-5), "mismatch vs pure-JAX reference"

    print("KERNEL_OK")
</pallas_src>

<mosaic_0001>
module attributes {stable_mosaic.version = 11 : i64} {
  func.func @_proj_kernel(%arg0: i32, %arg1: memref<16x784xbf16, #tpu.memory_space<vmem>>, %arg2: memref<784x1024xbf16, #tpu.memory_space<vmem>>, %arg3: memref<1x1024xf32, #tpu.memory_space<vmem>>, %arg4: memref<16x1024xf32, #tpu.memory_space<vmem>>) attributes {dimension_semantics = [#tpu.dimension_semantics<parallel>], iteration_bounds = array<i64: 1>, scalar_prefetch = 0 : i64, scratch_operands = 0 : i64, tpu.core_type = #tpu.core_type<tc>, window_params = [{transform_indices = @transform_0, window_bounds = array<i64: 16, 784>}, {pipeline_mode = #tpu.pipeline_mode<synchronous>, transform_indices = @transform_1, window_bounds = array<i64: 784, 1024>}, {pipeline_mode = #tpu.pipeline_mode<synchronous>, transform_indices = @transform_2, window_bounds = array<i64: 1, 1024>}, {transform_indices = @transform_3, window_bounds = array<i64: 16, 1024>}]} {
    %c0 = arith.constant 0 : index
    %c0_0 = arith.constant 0 : index
    %0 = vector.load %arg1[%c0, %c0_0] : memref<16x784xbf16, #tpu.memory_space<vmem>>, vector<16x784xbf16>
    %c0_1 = arith.constant 0 : index
    %c0_2 = arith.constant 0 : index
    %1 = vector.load %arg2[%c0_1, %c0_2] : memref<784x1024xbf16, #tpu.memory_space<vmem>>, vector<784x1024xbf16>
    %cst = arith.constant dense<0.000000e+00> : vector<16x1024xf32>
    %2 = tpu.matmul %0, %1, %cst {dimension_numbers = #tpu.dot_dimension_numbers<[1], [0], [0], [1], [0, 0, 1, 1], [], []>} : vector<16x784xbf16>, vector<784x1024xbf16>, vector<16x1024xf32> -> vector<16x1024xf32>
    %c0_3 = arith.constant 0 : index
    %c0_4 = arith.constant 0 : index
    %3 = vector.load %arg3[%c0_3, %c0_4] : memref<1x1024xf32, #tpu.memory_space<vmem>>, vector<1x1024xf32>
    %4 = vector.broadcast %3 : vector<1x1024xf32> to vector<16x1024xf32>
    %5 = arith.addf %2, %4 : vector<16x1024xf32>
    %c0_5 = arith.constant 0 : index
    %c0_6 = arith.constant 0 : index
    %6 = vector.load %arg4[%c0_5, %c0_6] : memref<16x1024xf32, #tpu.memory_space<vmem>>, vector<16x1024xf32>
    tpu.vector_store %arg4[%c0_5, %c0_6], %5 {strides = array<i32>} : memref<16x1024xf32, #tpu.memory_space<vmem>>, vector<16x1024xf32>,
    return
  }
  func.func @transform_0(%arg0: i32) -> (i32, i32) {
    %c0_i32 = arith.constant 0 : i32
    %c0_i32_0 = arith.constant 0 : i32
    return %arg0, %c0_i32 : i32, i32
  }
  func.func @transform_1(%arg0: i32) -> (i32, i32) {
    %c0_i32 = arith.constant 0 : i32
    %c0_i32_0 = arith.constant 0 : i32
    %c0_i32_1 = arith.constant 0 : i32
    return %c0_i32, %c0_i32_0 : i32, i32
  }
  func.func @transform_2(%arg0: i32) -> (i32, i32) {
    %c0_i32 = arith.constant 0 : i32
    %c0_i32_0 = arith.constant 0 : i32
    %c0_i32_1 = arith.constant 0 : i32
    return %c0_i32, %c0_i32_0 : i32, i32
  }
  func.func @transform_3(%arg0: i32) -> (i32, i32) {
    %c0_i32 = arith.constant 0 : i32
    %c0_i32_0 = arith.constant 0 : i32
    return %arg0, %c0_i32 : i32, i32
  }
}

</mosaic_0001>

<bundles_post_ra>
// kernel: tpu_custom_call.1
= control target key start
LH: loop header
LB: loop body
LE: loop exit
PB: predicated region body
PF: predicated region fallthrough
CT: control target
= control target key end

     0   :  { %8 = vsyncpa [#allocation3], 0  ;;  %s5571_s0 = inlined_call_operand.hbm [shape: bf16[16,784], index: 0, kind: input, shape index: {}]   ;;  %s5572_s1 = inlined_call_operand.hbm [shape: bf16[784,1024], index: 1, kind: input, shape index: {}]   ;;  %s5573_s2 = inlined_call_operand.hbm [shape: f32[1,1024], index: 2, kind: input, shape index: {}]   ;;  %s5574_s3 = inlined_call_operand.hbm [shape: f32[16,1024], index: 3, kind: output, shape index: {}]  }
   0x1   :  { %9 = vsyncpa [#allocation6], 0  ;;  %s28_s14 = sshll.u32 %s5572_s1, 4  ;;  %s29_s14 = int_to_ptr.hbm [resolvable:$true] %s28_s14 }
   0x2   :  { %10 = vsyncpa [#allocation4], 0  ;;  %s5415_s15 = smov [#allocation5]   ;;  %s15_s19 = sshll.u32 %s5571_s0, 4  ;;  %s16_s19 = int_to_ptr.hbm [resolvable:$true] %s15_s19 }
   0x3   :  { %s30_s16 = sshll.u32 %s5415_s15, 4  ;;  %s5416_s20 = smov 512   ;;  %s31_s16 = int_to_ptr.vmem [resolvable:$true] %s30_s16 }
   0x4   :  { %s5417_s21 = smov 32   ;;  %s5418_s22 = smov [#allocation2]  }
   0x5   :  { %36 = dma.hbm_to_vmem [thread:$0]  %s29_s14, 50176, %s31_s16, [#allocation6], %s5416_s20, %s5416_s20, %s5417_s21  }
   0x6   :  { %s17_s23 = sshll.u32 %s5418_s22, 4  ;;  %s5419_s24 = smov 448   ;;  %s18_s23 = int_to_ptr.vmem [resolvable:$true] %s17_s23 }
   0x7   :  { %s5420_s25 = smov 28   ;;  %s42_s27 = sshll.u32 %s5573_s2, 4  ;;  %s43_s27 = int_to_ptr.hbm [resolvable:$true] %s42_s27 }
   0x8   :  { %23 = dma.hbm_to_vmem [thread:$0]  %s16_s19, 896, %s18_s23, [#allocation3], %s5419_s24, %s5419_s24, %s5420_s25  }
   0x9   :  { %s5421_s28 = smov [#allocation7]  }
   0xa   :  { %s44_s29 = sshll.u32 %s5421_s28, 4  ;;  %s45_s29 = int_to_ptr.vmem [resolvable:$true] %s44_s29 }
   0xb   :  { %47 = dma.hbm_to_vmem [thread:$0]  %s43_s27, 128, %s45_s29, [#allocation6]  }
   0xc   :  { %5409 = dma.done.wait [#allocation3], 896  }
   0xd   :  { %5410 = vsyncadd [#allocation3], 4294966400 }
   0xe   :  { %5411 = dma.done.wait [#allocation6], 50304  }
   0xf   :  { %5412 = vsyncadd [#allocation6], 4294916992  ;;  %v3552_v0 = vld [vmem:[#allocation5 + $0x1c0] sm:$0xf]  ;;  %vm2474_vm0 = vcmask 130048   ;;  %s5422_s0 = smov [#allocation8]  }
  0x10   :  { %v4969_v1 = vld [vmem:[#allocation5 + $0x1dc] sm:$0xf0]  ;;  %s3282_s2 = sshll.u32 %s5422_s0, 4  ;;  %s3284_s5 = sshll.u32 %s5574_s3, 4  ;;  %s3283_s2 = int_to_ptr.vmem [resolvable:$true] %s3282_s2  ;;  %s3285_s5 = int_to_ptr.hbm [resolvable:$true] %s3284_s5 }
  0x11   :  { %v3808_v2 = vld [vmem:[#allocation5 + $0x3c0] sm:$0xf]  ;;  %v3553_v3 = vor.u32 %v4969_v1, %v3552_v0  ;;  %s5423_s6 = smov 1024   ;;  %s5424_s7 = smov 64  }
  0x12   :  { %v5033_v4 = vld [vmem:[#allocation5 + $0x3dc] sm:$0xf0] }
  0x13   :  { %v4064_v5 = vld [vmem:[#allocation5 + $0x5c0] sm:$0xf]  ;;  %v3809_v7 = vor.u32 %v5033_v4, %v3808_v2  ;;  %2478 = vmatpush.bf16.msra.mxu0 %v3553_v3 }
  0x14   :  { %v5097_v6 = vld [vmem:[#allocation5 + $0x5dc] sm:$0xf0] }
  0x15   :  { %v4065_v8 = vor.u32 %v5097_v6, %v4064_v5  ;;  %v4320_v9 = vld [vmem:[#allocation5 + $0x7c0] sm:$0xf]  ;;  %2492 = vmatpush.bf16.msra.mxu1 %v3809_v7 }
  0x16   :  { %v5161_v10 = vld [vmem:[#allocation5 + $0x7dc] sm:$0xf0] }
  0x17   :  { %v3520_v11 = vld [vmem:[#allocation5 + $0x180] sm:$0xf]  ;;  %v4321_v12 = vor.u32 %v5161_v10, %v4320_v9  ;;  %2506 = vmatpush.bf16.msra.mxu2 %v4065_v8 }
  0x18   :  { %v4961_v13 = vld [vmem:[#allocation5 + $0x19c] sm:$0xf0] }
  0x19   :  { %v3776_v14 = vld [vmem:[#allocation5 + $0x380] sm:$0xf]  ;;  %v3521_v16 = vor.u32 %v4961_v13, %v3520_v11  ;;  %2520 = vmatpush.bf16.msra.mxu3 %v4321_v12 }
  0x1a   :  { %v5025_v15 = vld [vmem:[#allocation5 + $0x39c] sm:$0xf0] }
  0x1b   :  { %v3777_v17 = vor.u32 %v5025_v15, %v3776_v14  ;;  %v4032_v18 = vld [vmem:[#allocation5 + $0x580] sm:$0xf]  ;;  %2479 = vmatpush.bf16.msra.mxu0 %v3521_v16 }
  0x1c   :  { %v5089_v19 = vld [vmem:[#allocation5 + $0x59c] sm:$0xf0] }
  0x1d   :  { %v4288_v20 = vld [vmem:[#allocation5 + $0x780] sm:$0xf]  ;;  %v4033_v21 = vor.u32 %v5089_v19, %v4032_v18  ;;  %2493 = vmatpush.bf16.msra.mxu1 %v3777_v17 }
  0x1e   :  { %v5153_v22 = vld [vmem:[#allocation5 + $0x79c] sm:$0xf0] }
  0x1f   :  { %v3488_v23 = vld [vmem:[#allocation5 + $0x140] sm:$0xf]  ;;  %v4289_v25 = vor.u32 %v5153_v22, %v4288_v20  ;;  %2507 = vmatpush.bf16.msra.mxu2 %v4033_v21 }
  0x20   :  { %v4953_v24 = vld [vmem:[#allocation5 + $0x15c] sm:$0xf0] }
  0x21   :  { %v3744_v26 = vld [vmem:[#allocation5 + $0x340] sm:$0xf]  ;;  %v3489_v29 = vor.u32 %v4953_v24, %v3488_v23  ;;  %2521 = vmatpush.bf16.msra.mxu3 %v4289_v25 }
  0x22   :  { %v5017_v27 = vld [vmem:[#allocation5 + $0x35c] sm:$0xf0] }
  0x23   :  { %v4000_v28 = vld [vmem:[#allocation5 + $0x540] sm:$0xf]  ;;  %v3745_v33 = vor.u32 %v5017_v27, %v3744_v26  ;;  %2480 = vmatpush.bf16.msra.mxu0 %v3489_v29 }
  0x24   :  { %v5081_v30 = vld [vmem:[#allocation5 + $0x55c] sm:$0xf0] }
  0x25   :  { %v4256_v31 = vld [vmem:[#allocation5 + $0x740] sm:$0xf]  ;;  %v4001_v34 = vor.u32 %v5081_v30, %v4000_v28  ;;  %2494 = vmatpush.bf16.msra.mxu1 %v3745_v33  ;;  %v3554_v33 = vld [vmem:[#allocation5 + $0x1e0] sm:$0xf0] }
  0x26   :  { %v5145_v32 = vld [vmem:[#allocation5 + $0x75c] sm:$0xf0] }
  0x27   :  { %v3456_v35 = vld [vmem:[#allocation5 + $0x100] sm:$0xf]  ;;  %v4257_v38 = vor.u32 %v5145_v32, %v4256_v31  ;;  %2508 = vmatpush.bf16.msra.mxu2 %v4001_v34  ;;  %v4965_v32 = vld [vmem:[#allocation5 + $0x1c4] sm:$0xf]  ;;  %v3308_v34 = vld [vmem:[#allocation2 + $0x8] sm:$0xf] }
  0x28   :  { %v4945_v36 = vld [vmem:[#allocation5 + $0x11c] sm:$0xf0] }
  0x29   :  { %v3712_v37 = vld [vmem:[#allocation5 + $0x300] sm:$0xf]  ;;  %v3457_v44 = vor.u32 %v4945_v36, %v3456_v35  ;;  %2522 = vmatpush.bf16.msra.mxu3 %v4257_v38  ;;  %v4906_v36 = vld [vmem:[#allocation2 + $0x20] sm:$0xf0] }
  0x2a   :  { %v5009_v39 = vld [vmem:[#allocation5 + $0x31c] sm:$0xf0] }
  0x2b   :  { %v3968_v40 = vld [vmem:[#allocation5 + $0x500] sm:$0xf]  ;;  %v3713_v45 = vor.u32 %v5009_v39, %v3712_v37  ;;  %2481 = vmatpush.bf16.msra.mxu0 %v3457_v44 }
  0x2c   :  { %v5073_v41 = vld [vmem:[#allocation5 + $0x51c] sm:$0xf0] }
  0x2d   :  { %v4224_v42 = vld [vmem:[#allocation5 + $0x700] sm:$0xf]  ;;  %v3969_v46 = vor.u32 %v5073_v41, %v3968_v40  ;;  %2495 = vmatpush.bf16.msra.mxu1 %v3713_v45  ;;  %v5029_v41 = vld [vmem:[#allocation5 + $0x3c4] sm:$0xf] }
  0x2e   :  { %v5137_v43 = vld [vmem:[#allocation5 + $0x71c] sm:$0xf0] }
  0x2f   :  { %v3424_v47 = vld [vmem:[#allocation5 + $0xc0] sm:$0xf]  ;;  %v4225_v50 = vor.u32 %v5137_v43, %v4224_v42  ;;  %2509 = vmatpush.bf16.msra.mxu2 %v3969_v46  ;;  %v3300_v42 = vld [vmem:[#allocation2] sm:$0xf]  ;;  %v4905_v43 = vld [vmem:[#allocation2 + $0x18] sm:$0xf0] }
  0x30   :  { %v4937_v48 = vld [vmem:[#allocation5 + $0xdc] sm:$0xf0]  ;;  %v3810_v46 = vld [vmem:[#allocation5 + $0x3e0] sm:$0xf0] }
  0x31   :  { %v3680_v49 = vld [vmem:[#allocation5 + $0x2c0] sm:$0xf]  ;;  %v3425_v56 = vor.u32 %v4937_v48, %v3424_v47  ;;  %2523 = vmatpush.bf16.msra.mxu3 %v4225_v50  ;;  %v4903_v47 = vld [vmem:[#allocation2 + $0xc] sm:$0xf]  ;;  %v3310_v48 = vld [vmem:[#allocation2 + $0x24] sm:$0xf0]  ;;  %v3557_v50 = vor.u32 %v4965_v32, %v3554_v33 }
  0x32   :  { %v5001_v51 = vld [vmem:[#allocation5 + $0x2dc] sm:$0xf0] }
  0x33   :  { %v3936_v52 = vld [vmem:[#allocation5 + $0x4c0] sm:$0xf]  ;;  %v3681_v57 = vor.u32 %v5001_v51, %v3680_v49  ;;  %2482 = vmatpush.bf16.msra.mxu0 %v3425_v56 }
  0x34   :  { %v5065_v53 = vld [vmem:[#allocation5 + $0x4dc] sm:$0xf0] }
  0x35   :  { %v4192_v54 = vld [vmem:[#allocation5 + $0x6c0] sm:$0xf]  ;;  %v3937_v58 = vor.u32 %v5065_v53, %v3936_v52  ;;  %2496 = vmatpush.bf16.msra.mxu1 %v3681_v57  ;;  %v4957_v57 = vld [vmem:[#allocation5 + $0x184] sm:$0xf] }
  0x36   :  { %v5129_v55 = vld [vmem:[#allocation5 + $0x6dc] sm:$0xf0] }
  0x37   :  { %v3392_v59 = vld [vmem:[#allocation5 + $0x80] sm:$0xf]  ;;  %v4193_v62 = vor.u32 %v5129_v55, %v4192_v54  ;;  %2510 = vmatpush.bf16.msra.mxu2 %v3937_v58  ;;  %v5454_v54 = vor.u32 %v4906_v36, %v3308_v34  ;;  %v5456_v55 = vor.u32 %v4905_v43, %v3300_v42  ;;  %v3522_v58 = vld [vmem:[#allocation5 + $0x1a0] sm:$0xf0] }
  0x38   :  { %v4929_v60 = vld [vmem:[#allocation5 + $0x9c] sm:$0xf0]  ;;  %v4933_v34 = vld [vmem:[#allocation5 + $0xc4] sm:$0xf] }
  0x39   :  { %v3648_v61 = vld [vmem:[#allocation5 + $0x280] sm:$0xf]  ;;  %v3393_v4 = vor.u32 %v4929_v60, %v3392_v59  ;;  %2524 = vmatpush.bf16.msra.mxu3 %v4193_v62  ;;  %v5458_v60 = vor.u32 %v4903_v47, %v3310_v48  ;;  %v3302_v62 = vld [vmem:[#allocation2 + $0x1c] sm:$0xf0]  ;;  %v4925_v48 = vld [vmem:[#allocation5 + $0x84] sm:$0xf] }
  0x3a   :  { %v4993_v63 = vld [vmem:[#allocation5 + $0x29c] sm:$0xf0] }
  0x3b   :  { %v3904_v0 = vld [vmem:[#allocation5 + $0x480] sm:$0xf]  ;;  %v3649_v6 = vor.u32 %v4993_v63, %v3648_v61  ;;  %2483 = vmatpush.bf16.msra.mxu0 %v3393_v4  ;;  %v4902_v61 = vld [vmem:[#allocation2 + $0x4] sm:$0xf]  ;;  %v3813_v63 = vor.u32 %v5029_v41, %v3810_v46  ;;  %v3525_v4 = vor.u32 %v4957_v57, %v3522_v58  ;;  %v3682_v41 = vld [vmem:[#allocation5 + $0x2e0] sm:$0xf0] }
  0x3c   :  { %v5057_v1 = vld [vmem:[#allocation5 + $0x49c] sm:$0xf0] }
  0x3d   :  { %v4160_v2 = vld [vmem:[#allocation5 + $0x680] sm:$0xf]  ;;  %v3905_v7 = vor.u32 %v5057_v1, %v3904_v0  ;;  %2497 = vmatpush.bf16.msra.mxu1 %v3649_v6  ;;  %v5021_v1 = vld [vmem:[#allocation5 + $0x384] sm:$0xf] }
  0x3e   :  { %v5121_v3 = vld [vmem:[#allocation5 + $0x69c] sm:$0xf0] }
  0x3f   :  { %v3360_v5 = vld [vmem:[#allocation5 + $0x40] sm:$0xf]  ;;  %v4161_v11 = vor.u32 %v5121_v3, %v4160_v2  ;;  %2511 = vmatpush.bf16.msra.mxu2 %v3905_v7  ;;  %v3778_v2 = vld [vmem:[#allocation5 + $0x3a0] sm:$0xf0] }
  0x40   :  { %v4921_v8 = vld [vmem:[#allocation5 + $0x5c] sm:$0xf0] }
  0x41   :  { %v3616_v9 = vld [vmem:[#allocation5 + $0x240] sm:$0xf]  ;;  %v3361_v18 = vor.u32 %v4921_v8, %v3360_v5  ;;  %2525 = vmatpush.bf16.msra.mxu3 %v4161_v11  ;;  %v5462_v8 = vor.u32 %v4902_v61, %v3302_v62  ;;  %v3490_v11 = vld [vmem:[#allocation5 + $0x160] sm:$0xf0] }
  0x42   :  { %v4985_v10 = vld [vmem:[#allocation5 + $0x25c] sm:$0xf0] }
  0x43   :  { %v3872_v12 = vld [vmem:[#allocation5 + $0x440] sm:$0xf]  ;;  %v3617_v23 = vor.u32 %v4985_v10, %v3616_v9  ;;  %2484 = vmatpush.bf16.msra.mxu0 %v3361_v18  ;;  %v4949_v10 = vld [vmem:[#allocation5 + $0x144] sm:$0xf] }
  0x44   :  { %v5049_v13 = vld [vmem:[#allocation5 + $0x45c] sm:$0xf0] }
  0x45   :  { %v4128_v14 = vld [vmem:[#allocation5 + $0x640] sm:$0xf]  ;;  %v3873_v24 = vor.u32 %v5049_v13, %v3872_v12  ;;  %2498 = vmatpush.bf16.msra.mxu1 %v3617_v23  ;;  %v3781_v12 = vor.u32 %v5021_v1, %v3778_v2  ;;  %v3458_v23 = vld [vmem:[#allocation5 + $0x120] sm:$0xf0] }
  0x46   :  { %v5113_v15 = vld [vmem:[#allocation5 + $0x65c] sm:$0xf0]  ;;  %v3362_v1 = vld [vmem:[#allocation5 + $0x60] sm:$0xf0] }
  0x47   :  { %v3328_v16 = vld [vmem:[#allocation5] sm:$0xf]  ;;  %v4129_v28 = vor.u32 %v5113_v15, %v4128_v14  ;;  %2512 = vmatpush.bf16.msra.mxu2 %v3873_v24  ;;  %v5013_v14 = vld [vmem:[#allocation5 + $0x344] sm:$0xf] }
  0x48   :  { %v4913_v17 = vld [vmem:[#allocation5 + $0x1c] sm:$0xf0]  ;;  %v3746_v15 = vld [vmem:[#allocation5 + $0x360] sm:$0xf0] }
  0x49   :  { %v3584_v19 = vld [vmem:[#allocation5 + $0x200] sm:$0xf]  ;;  %v3329_v35 = vor.u32 %v4913_v17, %v3328_v16  ;;  %2526 = vmatpush.bf16.msra.mxu3 %v4129_v28  ;;  %v3493_v17 = vor.u32 %v4949_v10, %v3490_v11  ;;  %v3749_v24 = vor.u32 %v5013_v14, %v3746_v15  ;;  %v4981_v2 = vld [vmem:[#allocation5 + $0x244] sm:$0xf] }
  0x4a   :  { %v4977_v20 = vld [vmem:[#allocation5 + $0x21c] sm:$0xf0]  ;;  %v3330_v14 = vld [vmem:[#allocation5 + $0x20] sm:$0xf0] }
  0x4b   :  { %v3840_v21 = vld [vmem:[#allocation5 + $0x400] sm:$0xf]  ;;  %v3585_v39 = vor.u32 %v4977_v20, %v3584_v19  ;;  %2485 = vmatpush.bf16.msra.mxu0 %v3329_v35  ;;  %v3426_v35 = vld [vmem:[#allocation5 + $0xe0] sm:$0xf0] }
  0x4c   :  { %v5041_v22 = vld [vmem:[#allocation5 + $0x41c] sm:$0xf0]  ;;  %v3429_v43 = vor.u32 %v4933_v34, %v3426_v35  ;;  %v5093_v15 = vld [vmem:[#allocation5 + $0x5c4] sm:$0xf] }
  0x4d   :  { %v4096_v25 = vld [vmem:[#allocation5 + $0x600] sm:$0xf]  ;;  %v3841_v40 = vor.u32 %v5041_v22, %v3840_v21  ;;  %2499 = vmatpush.bf16.msra.mxu1 %v3585_v39  ;;  %v4941_v22 = vld [vmem:[#allocation5 + $0x104] sm:$0xf] }
  0x4e   :  { %v5105_v26 = vld [vmem:[#allocation5 + $0x61c] sm:$0xf0]  ;;  %2486 = vmatmul.bf16.vlgmr.msra.gmra.mxu0 %v5456_v55  ;;  %v4834_v34 = vld [vmem:[#allocation5 + $0xbe0] sm:$0xf0] }
  0x4f   :  { %v4576_v27 = vld [vmem:[#allocation5 + $0x9c0] sm:$0xf]  ;;  %v4097_v44 = vor.u32 %v5105_v26, %v4096_v25  ;;  %2513 = vmatpush.bf16.msra.mxu2 %v3841_v40  ;;  %v5005_v26 = vld [vmem:[#allocation5 + $0x304] sm:$0xf] }
  0x50   :  { %v5225_v29 = vld [vmem:[#allocation5 + $0x9dc] sm:$0xf0]  ;;  %2500 = vmatmul.bf16.vlgmr.msra.gmra.mxu1 %v5462_v8  ;;  %v4997_v40 = vld [vmem:[#allocation5 + $0x2c4] sm:$0xf] }
  0x51   :  { %v4832_v30 = vld [vmem:[#allocation5 + $0xbc0] sm:$0xf]  ;;  %v4577_v45 = vor.u32 %v5225_v29, %v4576_v27  ;;  %2527 = vmatpush.bf16.msra.mxu3 %v4097_v44  ;;  %v3714_v27 = vld [vmem:[#allocation5 + $0x320] sm:$0xf0]  ;;  %v3461_v29 = vor.u32 %v4941_v22, %v3458_v23  ;;  %v3316_v23 = vld [vmem:[#allocation2 + $0x10] sm:$0xf] }
  0x52   :  { %v5289_v31 = vld [vmem:[#allocation5 + $0xbdc] sm:$0xf0]  ;;  %2514 = vmatmul.bf16.vlgmr.msra.gmra.mxu2 %v5454_v54  ;;  %v5085_v35 = vld [vmem:[#allocation5 + $0x584] sm:$0xf] }
  0x53   :  { %v4864_v37 = vld [vmem:[#allocation5 + $0xc00] sm:$0xf]  ;;  %v4833_v49 = vor.u32 %v5289_v31, %v4832_v30  ;;  %2534 = vmatpush.bf16.msrb.mxu0 %v4577_v45 }
  0x54   :  { %v5297_v38 = vld [vmem:[#allocation5 + $0xc1c] sm:$0xf0]  ;;  %2528 = vmatmul.bf16.vlgmr.msra.gmra.mxu3 %v5458_v60 }
  0x55   :  { %v4544_v51 = vld [vmem:[#allocation5 + $0x980] sm:$0xf]  ;;  %v4865_v59 = vor.u32 %v5297_v38, %v4864_v37  ;;  %2548 = vmatpush.bf16.msrb.mxu1 %v4833_v49  ;;  %2576 = vmatpush.bf16.msrb.mxu3 %v3557_v50  ;;  %v4908_v37 = vld [vmem:[#allocation2 + $0x30] sm:$0xf0]  ;;  %v3717_v38 = vor.u32 %v5005_v26, %v3714_v27  ;;  %v3394_v49 = vld [vmem:[#allocation5 + $0xa0] sm:$0xf0] }
  0x56   :  { %v5217_v52 = vld [vmem:[#allocation5 + $0x99c] sm:$0xf0]  ;;  %v3397_v58 = vor.u32 %v4925_v48, %v3394_v49  ;;  %v5277_v48 = vld [vmem:[#allocation5 + $0xb84] sm:$0xf] }
  0x57   :  { %v4800_v53 = vld [vmem:[#allocation5 + $0xb80] sm:$0xf]  ;;  %v4545_v0 = vor.u32 %v5217_v52, %v4544_v51  ;;  %2569 = vmatpush.bf16.msrb.mxu2 %v4865_v59  ;;  %v3685_v51 = vor.u32 %v4997_v40, %v3682_v41  ;;  %v4290_v40 = vld [vmem:[#allocation5 + $0x7a0] sm:$0xf0] }
  0x58   :  { %v5281_v56 = vld [vmem:[#allocation5 + $0xb9c] sm:$0xf0]  ;;  %v4802_v49 = vld [vmem:[#allocation5 + $0xba0] sm:$0xf0] }
  0x59   :  { %v4801_v3 = vor.u32 %v5281_v56, %v4800_v53  ;;  %v4512_v5 = vld [vmem:[#allocation5 + $0x940] sm:$0xf]  ;;  %2535 = vmatpush.bf16.msrb.mxu0 %v4545_v0  ;;  %2577 = vmatpush.bf16.msrb.mxu3 %v3525_v4  ;;  %v4989_v53 = vld [vmem:[#allocation5 + $0x284] sm:$0xf] }
  0x5a   :  { %v5209_v6 = vld [vmem:[#allocation5 + $0x95c] sm:$0xf0]  ;;  %v3650_v56 = vld [vmem:[#allocation5 + $0x2a0] sm:$0xf0] }
  0x5b   :  { %v4768_v7 = vld [vmem:[#allocation5 + $0xb40] sm:$0xf]  ;;  %2590 = vmatpush.bf16.msra.mxu2 %v3813_v63  ;;  %v4513_v13 = vor.u32 %v5209_v6, %v4512_v5  ;;  %2549 = vmatpush.bf16.msrb.mxu1 %v4801_v3  ;;  %v4917_v0 = vld [vmem:[#allocation5 + $0x44] sm:$0xf]  ;;  %v3653_v4 = vor.u32 %v4989_v53, %v3650_v56 }
  0x5c   :  { %v5273_v9 = vld [vmem:[#allocation5 + $0xb5c] sm:$0xf0]  ;;  %v3618_v3 = vld [vmem:[#allocation5 + $0x260] sm:$0xf0]  ;;  %v3365_v11 = vor.u32 %v4917_v0, %v3362_v1 }
  0x5d   :  { %v4769_v16 = vor.u32 %v5273_v9, %v4768_v7  ;;  %v4480_v18 = vld [vmem:[#allocation5 + $0x900] sm:$0xf]  ;;  %2536 = vmatpush.bf16.msrb.mxu0 %v4513_v13  ;;  %2578 = vmatpush.bf16.msrb.mxu3 %v3493_v17  ;;  %v4909_v13 = vld [vmem:[#allocation5 + $0x4] sm:$0xf] }
  0x5e   :  { %v5201_v19 = vld [vmem:[#allocation5 + $0x91c] sm:$0xf0]  ;;  %v5157_v17 = vld [vmem:[#allocation5 + $0x7c4] sm:$0xf]  ;;  %v3333_v27 = vor.u32 %v4909_v13, %v3330_v14 }
  0x5f   :  { %v4736_v20 = vld [vmem:[#allocation5 + $0xb00] sm:$0xf]  ;;  %2591 = vmatpush.bf16.msra.mxu2 %v3781_v12  ;;  %v4481_v25 = vor.u32 %v5201_v19, %v4480_v18  ;;  %2550 = vmatpush.bf16.msrb.mxu1 %v4769_v16  ;;  %v4066_v16 = vld [vmem:[#allocation5 + $0x5e0] sm:$0xf0] }
  0x60   :  { %v5265_v21 = vld [vmem:[#allocation5 + $0xb1c] sm:$0xf0]  ;;  %v4322_v18 = vld [vmem:[#allocation5 + $0x7e0] sm:$0xf0] }
  0x61   :  { %v4737_v28 = vor.u32 %v5265_v21, %v4736_v20  ;;  %v4448_v30 = vld [vmem:[#allocation5 + $0x8c0] sm:$0xf]  ;;  %2537 = vmatpush.bf16.msrb.mxu0 %v4481_v25  ;;  %2579 = vmatpush.bf16.msrb.mxu3 %v3461_v29  ;;  %v5221_v19 = vld [vmem:[#allocation5 + $0x9c4] sm:$0xf]  ;;  %v3621_v21 = vor.u32 %v4981_v2, %v3618_v3  ;;  %v4904_v29 = vld [vmem:[#allocation2 + $0x14] sm:$0xf] }
  0x62   :  { %v5193_v31 = vld [vmem:[#allocation5 + $0x8dc] sm:$0xf0]  ;;  %v4578_v20 = vld [vmem:[#allocation5 + $0x9e0] sm:$0xf0] }
  0x63   :  { %v4704_v32 = vld [vmem:[#allocation5 + $0xac0] sm:$0xf]  ;;  %2592 = vmatpush.bf16.msra.mxu2 %v3749_v24  ;;  %v4449_v39 = vor.u32 %v5193_v31, %v4448_v30  ;;  %2551 = vmatpush.bf16.msrb.mxu1 %v4737_v28  ;;  %v4907_v24 = vld [vmem:[#allocation2 + $0x28] sm:$0xf0]  ;;  %v4973_v25 = vld [vmem:[#allocation5 + $0x204] sm:$0xf]  ;;  %v4069_v31 = vor.u32 %v5093_v15, %v4066_v16 }
  0x64   :  { %v5257_v33 = vld [vmem:[#allocation5 + $0xadc] sm:$0xf0]  ;;  %v3586_v28 = vld [vmem:[#allocation5 + $0x220] sm:$0xf0]  ;;  %v3318_v30 = vld [vmem:[#allocation2 + $0x2c] sm:$0xf0] }
  0x65   :  { %v3324_v36 = vld [vmem:[#allocation2 + $0x18] sm:$0xf]  ;;  %v4705_v42 = vor.u32 %v5257_v33, %v4704_v32  ;;  %2538 = vmatpush.bf16.msrb.mxu0 %v4449_v39  ;;  %2580 = vmatpush.bf16.msrb.mxu3 %v3429_v43  ;;  %v4325_v32 = vor.u32 %v5157_v17, %v4322_v18  ;;  %v5285_v33 = vld [vmem:[#allocation5 + $0xbc4] sm:$0xf]  ;;  %v3589_v41 = vor.u32 %v4973_v25, %v3586_v28 }
  0x66   :  { %v4416_v44 = vld [vmem:[#allocation5 + $0x880] sm:$0xf]  ;;  %v5466_v50 = vor.u32 %v4908_v37, %v3324_v36  ;;  %v4581_v36 = vor.u32 %v5221_v19, %v4578_v20  ;;  %v5470_v37 = vor.u32 %v4907_v24, %v3316_v23  ;;  %v5149_v39 = vld [vmem:[#allocation5 + $0x784] sm:$0xf] }
  0x67   :  { %v5185_v45 = vld [vmem:[#allocation5 + $0x89c] sm:$0xf0]  ;;  %2593 = vmatpush.bf16.msra.mxu2 %v3717_v38  ;;  %2552 = vmatpush.bf16.msrb.mxu1 %v4705_v42  ;;  %v4034_v38 = vld [vmem:[#allocation5 + $0x5a0] sm:$0xf0]  ;;  %v5472_v42 = vor.u32 %v4904_v29, %v3318_v30 }
  0x68   :  { %v4672_v46 = vld [vmem:[#allocation5 + $0xa80] sm:$0xf]  ;;  %v4417_v52 = vor.u32 %v5185_v45, %v4416_v44  ;;  %4894 = vmatmul.msk.bf16.vlgmr.msrb.gmra.mxu2 %vm2474_vm0, %v5466_v50  ;;  %v5213_v43 = vld [vmem:[#allocation5 + $0x984] sm:$0xf]  ;;  %v4837_v45 = vor.u32 %v5285_v33, %v4834_v34 }
  0x69   :  { %v5249_v47 = vld [vmem:[#allocation5 + $0xa9c] sm:$0xf0]  ;;  %2581 = vmatpush.bf16.msrb.mxu3 %v3397_v58  ;;  %v4546_v44 = vld [vmem:[#allocation5 + $0x9a0] sm:$0xf0] }
  0x6a   :  { %v4673_v57 = vor.u32 %v5249_v47, %v4672_v46  ;;  %v4384_v59 = vld [vmem:[#allocation5 + $0x840] sm:$0xf]  ;;  %2539 = vmatpush.bf16.msrb.mxu0 %v4417_v52  ;;  %v4037_v46 = vor.u32 %v5085_v35, %v4034_v38  ;;  %v4293_v47 = vor.u32 %v5149_v39, %v4290_v40  ;;  %v4549_v52 = vor.u32 %v5213_v43, %v4546_v44  ;;  %v4002_v53 = vld [vmem:[#allocation5 + $0x560] sm:$0xf0] }
  0x6b   :  { %v5177_v61 = vld [vmem:[#allocation5 + $0x85c] sm:$0xf0]  ;;  %2594 = vmatpush.bf16.msra.mxu2 %v3685_v51  ;;  %v5077_v51 = vld [vmem:[#allocation5 + $0x544] sm:$0xf] }
  0x6c   :  { %v4640_v62 = vld [vmem:[#allocation5 + $0xa40] sm:$0xf]  ;;  %v4385_v5 = vor.u32 %v5177_v61, %v4384_v59  ;;  %2553 = vmatpush.bf16.msrb.mxu1 %v4673_v57  ;;  %v5141_v56 = vld [vmem:[#allocation5 + $0x744] sm:$0xf]  ;;  %v4805_v61 = vor.u32 %v5277_v48, %v4802_v49 }
  0x6d   :  { %v5241_v63 = vld [vmem:[#allocation5 + $0xa5c] sm:$0xf0]  ;;  %2582 = vmatpush.bf16.msrb.mxu3 %v3365_v11  ;;  %v4258_v57 = vld [vmem:[#allocation5 + $0x760] sm:$0xf0] }
  0x6e   :  { %v4352_v6 = vld [vmem:[#allocation5 + $0x800] sm:$0xf]  ;;  %v4641_v10 = vor.u32 %v5241_v63, %v4640_v62  ;;  %2540 = vmatpush.bf16.msrb.mxu0 %v4385_v5  ;;  %v5205_v58 = vld [vmem:[#allocation5 + $0x944] sm:$0xf]  ;;  %v4005_v62 = vor.u32 %v5077_v51, %v4002_v53  ;;  %v4261_v63 = vor.u32 %v5141_v56, %v4258_v57 }
  0x6f   :  { %v5169_v7 = vld [vmem:[#allocation5 + $0x81c] sm:$0xf0]  ;;  %2595 = vmatpush.bf16.msra.mxu2 %v3653_v4  ;;  %v4514_v59 = vld [vmem:[#allocation5 + $0x960] sm:$0xf0] }
  0x70   :  { %v4608_v9 = vld [vmem:[#allocation5 + $0xa00] sm:$0xf]  ;;  %v4353_v22 = vor.u32 %v5169_v7, %v4352_v6  ;;  %2554 = vmatpush.bf16.msrb.mxu1 %v4641_v10  ;;  %v5269_v0 = vld [vmem:[#allocation5 + $0xb44] sm:$0xf]  ;;  %v4517_v3 = vor.u32 %v5205_v58, %v4514_v59 }
  0x71   :  { %v5233_v12 = vld [vmem:[#allocation5 + $0xa1c] sm:$0xf0]  ;;  %2583 = vmatpush.bf16.msrb.mxu3 %v3333_v27  ;;  %v4770_v1 = vld [vmem:[#allocation5 + $0xb60] sm:$0xf0] }
  0x72   :  { %v4609_v26 = vor.u32 %v5233_v12, %v4608_v9  ;;  %2541 = vmatpush.bf16.msrb.mxu0 %v4353_v22  ;;  %v5069_v2 = vld [vmem:[#allocation5 + $0x504] sm:$0xf]  ;;  %v4773_v10 = vor.u32 %v5269_v0, %v4770_v1  ;;  %v3560_v0 = vld [vmem:[#allocation5 + $0x1c8] sm:$0xf] }
  0x73   :  { %2596 = vmatpush.bf16.msra.mxu2 %v3621_v21  ;;  %v3970_v4 = vld [vmem:[#allocation5 + $0x520] sm:$0xf0]  ;;  %v4970_v1 = vld [vmem:[#allocation5 + $0x1e4] sm:$0xf0] }
  0x74   :  { %2555 = vmatpush.bf16.msrb.mxu1 %v4609_v26  ;;  %2584 = vmatmul.bf16.vlgmr.msrb.gmra.mxu3 %v5456_v55  ;;  %v5133_v5 = vld [vmem:[#allocation5 + $0x704] sm:$0xf]  ;;  %v3973_v11 = vor.u32 %v5069_v2, %v3970_v4 }
  0x75   :  { %2632 = vmatpush.bf16.msra.mxu3 %v4581_v36  ;;  %2542 = vmatmul.bf16.vlgmr.msrb.gmra.mxu0 %v5470_v37  ;;  %v4226_v6 = vld [vmem:[#allocation5 + $0x720] sm:$0xf0] }
  0x76   :  { %2604 = vmatpush.bf16.msra.mxu0 %v4069_v31  ;;  %v5197_v7 = vld [vmem:[#allocation5 + $0x904] sm:$0xf]  ;;  %v4229_v12 = vor.u32 %v5133_v5, %v4226_v6  ;;  %v4072_v5 = vld [vmem:[#allocation5 + $0x5c8] sm:$0xf] }
  0x77   :  { %2597 = vmatpush.bf16.msra.mxu2 %v3589_v41  ;;  %2556 = vmatmul.bf16.vlgmr.msrb.gmra.mxu1 %v5472_v42  ;;  %v4482_v9 = vld [vmem:[#allocation5 + $0x920] sm:$0xf0]  ;;  %v5098_v6 = vld [vmem:[#allocation5 + $0x5e4] sm:$0xf0] }
  0x78   :  { %2618 = vmatpush.bf16.msra.mxu1 %v4325_v32  ;;  %v5261_v13 = vld [vmem:[#allocation5 + $0xb04] sm:$0xf]  ;;  %v4485_v16 = vor.u32 %v5197_v7, %v4482_v9 }
  0x79   :  { %2633 = vmatpush.bf16.msra.mxu3 %v4549_v52  ;;  %v4738_v14 = vld [vmem:[#allocation5 + $0xb20] sm:$0xf0] }
  0x7a   :  { %2605 = vmatpush.bf16.msra.mxu0 %v4037_v46  ;;  %2598 = vmatmul.bf16.vlgmr.msra.gmra.mxu2 %v5462_v8  ;;  %v5061_v15 = vld [vmem:[#allocation5 + $0x4c4] sm:$0xf]  ;;  %v4741_v22 = vor.u32 %v5261_v13, %v4738_v14  ;;  %v3561_v13 = vor.u32 %v4970_v1, %v3560_v0  ;;  %v4328_v14 = vld [vmem:[#allocation5 + $0x7c8] sm:$0xf] }
  0x7b   :  { %2646 = vmatpush.bf16.msrb.mxu2 %v4837_v45  ;;  %v3938_v17 = vld [vmem:[#allocation5 + $0x4e0] sm:$0xf0]  ;;  %v4938_v0 = vld [vmem:[#allocation5 + $0xe4] sm:$0xf0] }
  0x7c   :  { %2619 = vmatpush.bf16.msra.mxu1 %v4293_v47  ;;  %v5125_v18 = vld [vmem:[#allocation5 + $0x6c4] sm:$0xf]  ;;  %v3941_v23 = vor.u32 %v5061_v15, %v3938_v17  ;;  %v5162_v15 = vld [vmem:[#allocation5 + $0x7e4] sm:$0xf0] }
  0x7d   :  { %2634 = vmatpush.bf16.msra.mxu3 %v4517_v3  ;;  %v4194_v19 = vld [vmem:[#allocation5 + $0x6e0] sm:$0xf0]  ;;  %v3816_v17 = vld [vmem:[#allocation5 + $0x3c8] sm:$0xf] }
  0x7e   :  { %2606 = vmatpush.bf16.msra.mxu0 %v4005_v62  ;;  %v5189_v20 = vld [vmem:[#allocation5 + $0x8c4] sm:$0xf]  ;;  %v4197_v24 = vor.u32 %v5125_v18, %v4194_v19  ;;  %v5034_v18 = vld [vmem:[#allocation5 + $0x3e4] sm:$0xf0]  ;;  %v4073_v19 = vor.u32 %v5098_v6, %v4072_v5 }
  0x7f   :  { %2647 = vmatpush.bf16.msrb.mxu2 %v4805_v61  ;;  %v4450_v21 = vld [vmem:[#allocation5 + $0x8e0] sm:$0xf0]  ;;  %v4200_v5 = vld [vmem:[#allocation5 + $0x6c8] sm:$0xf] }
  0x80   :  { %2620 = vmatpush.bf16.msra.mxu1 %v4261_v63  ;;  %v5253_v25 = vld [vmem:[#allocation5 + $0xac4] sm:$0xf]  ;;  %v4453_v28 = vor.u32 %v5189_v20, %v4450_v21  ;;  %v3528_v21 = vld [vmem:[#allocation5 + $0x188] sm:$0xf] }
  0x81   :  { %v4706_v26 = vld [vmem:[#allocation5 + $0xae0] sm:$0xf0]  ;;  %2635 = vmatpush.bf16.msra.mxu3 %v4485_v16  ;;  %v5130_v6 = vld [vmem:[#allocation5 + $0x6e4] sm:$0xf0] }
  0x82   :  { %2607 = vmatpush.bf16.msra.mxu0 %v3973_v11  ;;  %v5053_v27 = vld [vmem:[#allocation5 + $0x484] sm:$0xf]  ;;  %v4709_v34 = vor.u32 %v5253_v25, %v4706_v26  ;;  %v5090_v25 = vld [vmem:[#allocation5 + $0x5a4] sm:$0xf0]  ;;  %v3817_v26 = vor.u32 %v5034_v18, %v3816_v17 }
  0x83   :  { %2648 = vmatpush.bf16.msrb.mxu2 %v4773_v10  ;;  %v3906_v29 = vld [vmem:[#allocation5 + $0x4a0] sm:$0xf0]  ;;  %v4168_v18 = vld [vmem:[#allocation5 + $0x688] sm:$0xf] }
  0x84   :  { %2621 = vmatpush.bf16.msra.mxu1 %v4229_v12  ;;  %v5117_v30 = vld [vmem:[#allocation5 + $0x684] sm:$0xf]  ;;  %v3909_v35 = vor.u32 %v5053_v27, %v3906_v29  ;;  %v4296_v27 = vld [vmem:[#allocation5 + $0x788] sm:$0xf] }
  0x85   :  { %v4162_v31 = vld [vmem:[#allocation5 + $0x6a0] sm:$0xf0]  ;;  %2636 = vmatpush.bf16.msra.mxu3 %v4453_v28  ;;  %v5154_v28 = vld [vmem:[#allocation5 + $0x7a4] sm:$0xf0] }
  0x86   :  { %v5181_v32 = vld [vmem:[#allocation5 + $0x884] sm:$0xf]  ;;  %2608 = vmatpush.bf16.msra.mxu0 %v3941_v23  ;;  %v4165_v36 = vor.u32 %v5117_v30, %v4162_v31  ;;  %v4329_v23 = vor.u32 %v5162_v15, %v4328_v14  ;;  %v3784_v30 = vld [vmem:[#allocation5 + $0x388] sm:$0xf]  ;;  %v4201_v14 = vor.u32 %v5130_v6, %v4200_v5 }
  0x87   :  { %v4418_v33 = vld [vmem:[#allocation5 + $0x8a0] sm:$0xf0]  ;;  %2649 = vmatpush.bf16.msrb.mxu2 %v4741_v22  ;;  %v4962_v22 = vld [vmem:[#allocation5 + $0x1a4] sm:$0xf0] }
  0x88   :  { %2622 = vmatpush.bf16.msra.mxu1 %v4197_v24  ;;  %v5245_v38 = vld [vmem:[#allocation5 + $0xa84] sm:$0xf]  ;;  %v4421_v41 = vor.u32 %v5181_v32, %v4418_v33  ;;  %v4040_v24 = vld [vmem:[#allocation5 + $0x588] sm:$0xf]  ;;  %v3529_v29 = vor.u32 %v4962_v22, %v3528_v21 }
  0x89   :  { %v4674_v39 = vld [vmem:[#allocation5 + $0xaa0] sm:$0xf0]  ;;  %v5026_v31 = vld [vmem:[#allocation5 + $0x3a4] sm:$0xf0]  ;;  %v4041_v32 = vor.u32 %v5090_v25, %v4040_v24 }
  0x8a   :  { %v5045_v40 = vld [vmem:[#allocation5 + $0x444] sm:$0xf]  ;;  %v4677_v48 = vor.u32 %v5245_v38, %v4674_v39  ;;  %2609 = vmatpush.bf16.msra.mxu0 %v3909_v35  ;;  %2637 = vmatpush.bf16.msra.mxu3 %v4421_v41  ;;  %v3496_v33 = vld [vmem:[#allocation5 + $0x148] sm:$0xf]  ;;  %v4297_v35 = vor.u32 %v5154_v28, %v4296_v27  ;;  %v3785_v39 = vor.u32 %v5026_v31, %v3784_v30 }
  0x8b   :  { %v3874_v43 = vld [vmem:[#allocation5 + $0x460] sm:$0xf0]  ;;  %2650 = vmatpush.bf16.msrb.mxu2 %v4709_v34  ;;  %v4954_v34 = vld [vmem:[#allocation5 + $0x164] sm:$0xf0] }
  0x8c   :  { %v5109_v44 = vld [vmem:[#allocation5 + $0x644] sm:$0xf]  ;;  %2623 = vmatpush.bf16.msra.mxu1 %v4165_v36  ;;  %v3877_v52 = vor.u32 %v5045_v40, %v3874_v43  ;;  %v4008_v36 = vld [vmem:[#allocation5 + $0x548] sm:$0xf]  ;;  %v3497_v43 = vor.u32 %v4954_v34, %v3496_v33 }
  0x8d   :  { %v4130_v45 = vld [vmem:[#allocation5 + $0x660] sm:$0xf0]  ;;  %v5082_v38 = vld [vmem:[#allocation5 + $0x564] sm:$0xf0] }
  0x8e   :  { %v5173_v46 = vld [vmem:[#allocation5 + $0x844] sm:$0xf]  ;;  %v4133_v53 = vor.u32 %v5109_v44, %v4130_v45  ;;  %2610 = vmatpush.bf16.msra.mxu0 %v3877_v52  ;;  %v4264_v40 = vld [vmem:[#allocation5 + $0x748] sm:$0xf] }
  0x8f   :  { %v4386_v47 = vld [vmem:[#allocation5 + $0x860] sm:$0xf0]  ;;  %2651 = vmatpush.bf16.msrb.mxu2 %v4677_v48  ;;  %v5146_v41 = vld [vmem:[#allocation5 + $0x764] sm:$0xf0] }
  0x90   :  { %v5237_v49 = vld [vmem:[#allocation5 + $0xa44] sm:$0xf]  ;;  %v4389_v59 = vor.u32 %v5173_v46, %v4386_v47  ;;  %2624 = vmatpush.bf16.msra.mxu1 %v4133_v53  ;;  %v3752_v44 = vld [vmem:[#allocation5 + $0x348] sm:$0xf]  ;;  %v4009_v46 = vor.u32 %v5082_v38, %v4008_v36 }
  0x91   :  { %v4642_v51 = vld [vmem:[#allocation5 + $0xa60] sm:$0xf0]  ;;  %v5018_v45 = vld [vmem:[#allocation5 + $0x364] sm:$0xf0] }
  0x92   :  { %v5037_v56 = vld [vmem:[#allocation5 + $0x404] sm:$0xf]  ;;  %v4645_v3 = vor.u32 %v5237_v49, %v4642_v51  ;;  %2638 = vmatpush.bf16.msra.mxu3 %v4389_v59  ;;  %v3464_v47 = vld [vmem:[#allocation5 + $0x108] sm:$0xf]  ;;  %v4265_v49 = vor.u32 %v5146_v41, %v4264_v40  ;;  %v3753_v53 = vor.u32 %v5018_v45, %v3752_v44 }
  0x93   :  { %v3842_v57 = vld [vmem:[#allocation5 + $0x420] sm:$0xf0]  ;;  %v4946_v48 = vld [vmem:[#allocation5 + $0x124] sm:$0xf0] }
  0x94   :  { %v5101_v58 = vld [vmem:[#allocation5 + $0x604] sm:$0xf]  ;;  %v3845_v7 = vor.u32 %v5037_v56, %v3842_v57  ;;  %2652 = vmatpush.bf16.msrb.mxu2 %v4645_v3  ;;  %v3976_v51 = vld [vmem:[#allocation5 + $0x508] sm:$0xf] }
  0x95   :  { %v4098_v61 = vld [vmem:[#allocation5 + $0x620] sm:$0xf0]  ;;  %v5074_v52 = vld [vmem:[#allocation5 + $0x524] sm:$0xf0] }
  0x96   :  { %v5165_v62 = vld [vmem:[#allocation5 + $0x804] sm:$0xf]  ;;  %v4101_v9 = vor.u32 %v5101_v58, %v4098_v61  ;;  %2611 = vmatpush.bf16.msra.mxu0 %v3845_v7  ;;  %v4232_v56 = vld [vmem:[#allocation5 + $0x708] sm:$0xf]  ;;  %v3465_v58 = vor.u32 %v4946_v48, %v3464_v47 }
  0x97   :  { %v4354_v63 = vld [vmem:[#allocation5 + $0x820] sm:$0xf0]  ;;  %v5138_v57 = vld [vmem:[#allocation5 + $0x724] sm:$0xf0] }
  0x98   :  { %v5293_v2 = vld [vmem:[#allocation5 + $0xc04] sm:$0xf]  ;;  %v4357_v12 = vor.u32 %v5165_v62, %v4354_v63  ;;  %2625 = vmatpush.bf16.msra.mxu1 %v4101_v9  ;;  %v3720_v59 = vld [vmem:[#allocation5 + $0x308] sm:$0xf]  ;;  %v3977_v62 = vor.u32 %v5074_v52, %v3976_v51  ;;  %v4233_v1 = vor.u32 %v5138_v57, %v4232_v56  ;;  %v4966_v56 = vld [vmem:[#allocation5 + $0x1cc] sm:$0xf] }
  0x99   :  { %v4866_v4 = vld [vmem:[#allocation5 + $0xc20] sm:$0xf0]  ;;  %2612 = vmatmul.bf16.vlgmr.msra.gmra.mxu0 %v5454_v54  ;;  %v5010_v61 = vld [vmem:[#allocation5 + $0x324] sm:$0xf0]  ;;  %v3562_v57 = vld [vmem:[#allocation5 + $0x1e8] sm:$0xf0] }
  0x9a   :  { %v5229_v10 = vld [vmem:[#allocation5 + $0xa04] sm:$0xf]  ;;  %v4869_v16 = vor.u32 %v5293_v2, %v4866_v4  ;;  %2639 = vmatpush.bf16.msra.mxu3 %v4357_v12  ;;  %2702 = vmatpush.bf16.msrb.mxu0 %v4073_v19  ;;  %v3432_v63 = vld [vmem:[#allocation5 + $0xc8] sm:$0xf]  ;;  %v3721_v4 = vor.u32 %v5010_v61, %v3720_v59  ;;  %v3565_v6 = vor.u32 %v4966_v56, %v3562_v57 }
  0x9b   :  { %v4610_v11 = vld [vmem:[#allocation5 + $0xa20] sm:$0xf0]  ;;  %2626 = vmatmul.bf16.vlgmr.msra.gmra.mxu1 %v5458_v60  ;;  %v3944_v2 = vld [vmem:[#allocation5 + $0x4c8] sm:$0xf]  ;;  %v3433_v7 = vor.u32 %v4938_v0, %v3432_v63 }
  0x9c   :  { %v4613_v20 = vor.u32 %v5229_v10, %v4610_v11  ;;  %2674 = vmatpush.bf16.msrb.mxu1 %v3561_v13  ;;  %v5066_v3 = vld [vmem:[#allocation5 + $0x4e4] sm:$0xf0] }
  0x9d   :  { %2640 = vmatmul.bf16.vlgmr.msra.gmra.mxu3 %v5470_v37  ;;  %v3688_v9 = vld [vmem:[#allocation5 + $0x2c8] sm:$0xf]  ;;  %v3945_v11 = vor.u32 %v5066_v3, %v3944_v2  ;;  %v5030_v3 = vld [vmem:[#allocation5 + $0x3cc] sm:$0xf] }
  0x9e   :  { %2667 = vmatpush.bf16.msrb.mxu3 %v4869_v16  ;;  %2653 = vmatpush.bf16.msrb.mxu2 %v4613_v20  ;;  %v5002_v10 = vld [vmem:[#allocation5 + $0x2e4] sm:$0xf0] }
  0x9f   :  { %2703 = vmatpush.bf16.msrb.mxu0 %v4041_v32  ;;  %v3400_v12 = vld [vmem:[#allocation5 + $0x88] sm:$0xf]  ;;  %v3689_v17 = vor.u32 %v5002_v10, %v3688_v9  ;;  %v4958_v9 = vld [vmem:[#allocation5 + $0x18c] sm:$0xf] }
  0xa0   :  { %2675 = vmatpush.bf16.msrb.mxu1 %v3529_v29  ;;  %v4930_v13 = vld [vmem:[#allocation5 + $0xa4] sm:$0xf0]  ;;  %v3530_v10 = vld [vmem:[#allocation5 + $0x1a8] sm:$0xf0] }
  0xa1   :  { %2654 = vmatmul.bf16.vlgmr.msrb.gmra.mxu2 %v5472_v42  ;;  %v3912_v15 = vld [vmem:[#allocation5 + $0x488] sm:$0xf]  ;;  %v3401_v20 = vor.u32 %v4930_v13, %v3400_v12 }
  0xa2   :  { %2716 = vmatpush.bf16.msra.mxu2 %v4329_v23  ;;  %2688 = vmatpush.bf16.msra.mxu3 %v3817_v26  ;;  %v5058_v16 = vld [vmem:[#allocation5 + $0x4a4] sm:$0xf0] }
  0xa3   :  { %2704 = vmatpush.bf16.msrb.mxu0 %v4009_v46  ;;  %v5122_v19 = vld [vmem:[#allocation5 + $0x6a4] sm:$0xf0]  ;;  %v3913_v23 = vor.u32 %v5058_v16, %v3912_v15 }
  0xa4   :  { %2676 = vmatpush.bf16.msrb.mxu1 %v3497_v43  ;;  %v3656_v21 = vld [vmem:[#allocation5 + $0x288] sm:$0xf]  ;;  %v4169_v26 = vor.u32 %v5122_v19, %v4168_v18  ;;  %v3786_v18 = vld [vmem:[#allocation5 + $0x3a8] sm:$0xf0]  ;;  %v3533_v19 = vor.u32 %v4958_v9, %v3530_v10 }
  0xa5   :  { %v4994_v22 = vld [vmem:[#allocation5 + $0x2a4] sm:$0xf0]  ;;  %v3658_v9 = vld [vmem:[#allocation5 + $0x2a8] sm:$0xf0] }
  0xa6   :  { %2717 = vmatpush.bf16.msra.mxu2 %v4297_v35  ;;  %2689 = vmatpush.bf16.msra.mxu3 %v3785_v39  ;;  %v3368_v24 = vld [vmem:[#allocation5 + $0x48] sm:$0xf]  ;;  %v3657_v29 = vor.u32 %v4994_v22, %v3656_v21  ;;  %v4950_v21 = vld [vmem:[#allocation5 + $0x14c] sm:$0xf] }
  0xa7   :  { %2705 = vmatpush.bf16.msrb.mxu0 %v3977_v62  ;;  %v4922_v25 = vld [vmem:[#allocation5 + $0x64] sm:$0xf0]  ;;  %v3498_v22 = vld [vmem:[#allocation5 + $0x168] sm:$0xf0] }
  0xa8   :  { %2677 = vmatpush.bf16.msrb.mxu1 %v3465_v58  ;;  %v3880_v27 = vld [vmem:[#allocation5 + $0x448] sm:$0xf]  ;;  %v3369_v32 = vor.u32 %v4922_v25, %v3368_v24 }
  0xa9   :  { %v5050_v28 = vld [vmem:[#allocation5 + $0x464] sm:$0xf0] }
  0xaa   :  { %2718 = vmatpush.bf16.msra.mxu2 %v4265_v49  ;;  %2690 = vmatpush.bf16.msra.mxu3 %v3753_v53  ;;  %v4136_v30 = vld [vmem:[#allocation5 + $0x648] sm:$0xf]  ;;  %v3881_v36 = vor.u32 %v5050_v28, %v3880_v27 }
  0xab   :  { %2706 = vmatpush.bf16.msrb.mxu0 %v3945_v11  ;;  %v5114_v31 = vld [vmem:[#allocation5 + $0x664] sm:$0xf0] }
  0xac   :  { %2678 = vmatpush.bf16.msrb.mxu1 %v3433_v7  ;;  %v3624_v33 = vld [vmem:[#allocation5 + $0x248] sm:$0xf]  ;;  %v4137_v41 = vor.u32 %v5114_v31, %v4136_v30  ;;  %v3754_v30 = vld [vmem:[#allocation5 + $0x368] sm:$0xf0]  ;;  %v3501_v31 = vor.u32 %v4950_v21, %v3498_v22 }
  0xad   :  { %4895 = vmatmul.msk.bf16.vlgmr.msrb.gmra.mxu3 %vm2474_vm0, %v5466_v50  ;;  %v4986_v34 = vld [vmem:[#allocation5 + $0x264] sm:$0xf0]  ;;  %v3626_v21 = vld [vmem:[#allocation5 + $0x268] sm:$0xf0] }
  0xae   :  { %2719 = vmatpush.bf16.msra.mxu2 %v4233_v1  ;;  %2691 = vmatpush.bf16.msra.mxu3 %v3721_v4  ;;  %v3336_v35 = vld [vmem:[#allocation5 + $0x8] sm:$0xf]  ;;  %v3625_v47 = vor.u32 %v4986_v34, %v3624_v33  ;;  %v3818_v4 = vld [vmem:[#allocation5 + $0x3e8] sm:$0xf0] }
  0xaf   :  { %2707 = vmatpush.bf16.msrb.mxu0 %v3913_v23  ;;  %v4914_v38 = vld [vmem:[#allocation5 + $0x24] sm:$0xf0]  ;;  %v3821_v12 = vor.u32 %v5030_v3, %v3818_v4  ;;  %v4942_v33 = vld [vmem:[#allocation5 + $0x10c] sm:$0xf] }
  0xb0   :  { %2679 = vmatpush.bf16.msrb.mxu1 %v3401_v20  ;;  %v4584_v39 = vld [vmem:[#allocation5 + $0x9c8] sm:$0xf]  ;;  %v3337_v52 = vor.u32 %v4914_v38, %v3336_v35  ;;  %v3466_v34 = vld [vmem:[#allocation5 + $0x128] sm:$0xf0] }
  0xb1   :  { %v5226_v40 = vld [vmem:[#allocation5 + $0x9e4] sm:$0xf0] }
  0xb2   :  { %2720 = vmatpush.bf16.msra.mxu2 %v4201_v14  ;;  %2692 = vmatpush.bf16.msra.mxu3 %v3689_v17  ;;  %v3592_v43 = vld [vmem:[#allocation5 + $0x208] sm:$0xf]  ;;  %v4585_v58 = vor.u32 %v5226_v40, %v4584_v39  ;;  %v5022_v17 = vld [vmem:[#allocation5 + $0x38c] sm:$0xf] }
  0xb3   :  { %v3848_v44 = vld [vmem:[#allocation5 + $0x408] sm:$0xf]  ;;  %2708 = vmatpush.bf16.msrb.mxu0 %v3881_v36  ;;  %v3789_v24 = vor.u32 %v5022_v17, %v3786_v18 }
  0xb4   :  { %v5042_v45 = vld [vmem:[#allocation5 + $0x424] sm:$0xf0]  ;;  %2680 = vmatpush.bf16.msrb.mxu1 %v3369_v32 }
  0xb5   :  { %v4104_v46 = vld [vmem:[#allocation5 + $0x608] sm:$0xf]  ;;  %v3849_v59 = vor.u32 %v5042_v45, %v3848_v44  ;;  %v3722_v44 = vld [vmem:[#allocation5 + $0x328] sm:$0xf0]  ;;  %v3469_v45 = vor.u32 %v4942_v33, %v3466_v34 }
  0xb6   :  { %2721 = vmatpush.bf16.msra.mxu2 %v4169_v26  ;;  %2693 = vmatpush.bf16.msra.mxu3 %v3657_v29  ;;  %v5106_v48 = vld [vmem:[#allocation5 + $0x624] sm:$0xf0]  ;;  %v5014_v29 = vld [vmem:[#allocation5 + $0x34c] sm:$0xf] }
  0xb7   :  { %v4872_v49 = vld [vmem:[#allocation5 + $0xc08] sm:$0xf]  ;;  %v4105_v0 = vor.u32 %v5106_v48, %v4104_v46  ;;  %2709 = vmatpush.bf16.msrb.mxu0 %v3849_v59  ;;  %v3757_v36 = vor.u32 %v5014_v29, %v3754_v30  ;;  %v3434_v48 = vld [vmem:[#allocation5 + $0xe8] sm:$0xf0] }
  0xb8   :  { %v5298_v51 = vld [vmem:[#allocation5 + $0xc24] sm:$0xf0]  ;;  %2681 = vmatpush.bf16.msrb.mxu1 %v3337_v52  ;;  %v3690_v59 = vld [vmem:[#allocation5 + $0x2e8] sm:$0xf0] }
  0xb9   :  { %v4978_v53 = vld [vmem:[#allocation5 + $0x224] sm:$0xf0]  ;;  %v4873_v2 = vor.u32 %v5298_v51, %v4872_v49  ;;  %v4330_v33 = vld [vmem:[#allocation5 + $0x7e8] sm:$0xf0] }
  0xba   :  { %v4840_v61 = vld [vmem:[#allocation5 + $0xbc8] sm:$0xf]  ;;  %2722 = vmatpush.bf16.msra.mxu2 %v4137_v41  ;;  %2694 = vmatpush.bf16.msra.mxu3 %v3625_v47  ;;  %v3593_v5 = vor.u32 %v4978_v53, %v3592_v43  ;;  %v5006_v43 = vld [vmem:[#allocation5 + $0x30c] sm:$0xf] }
  0xbb   :  { %v5290_v62 = vld [vmem:[#allocation5 + $0xbe4] sm:$0xf0]  ;;  %2765 = vmatpush.bf16.msra.mxu0 %v4873_v2  ;;  %2682 = vmatmul.bf16.vlgmr.msrb.gmra.mxu1 %v5456_v55  ;;  %v4934_v47 = vld [vmem:[#allocation5 + $0xcc] sm:$0xf]  ;;  %v3725_v51 = vor.u32 %v5006_v43, %v3722_v44 }
  0xbc   :  { %v4552_v63 = vld [vmem:[#allocation5 + $0x988] sm:$0xf]  ;;  %v4841_v7 = vor.u32 %v5290_v62, %v4840_v61  ;;  %2730 = vmatpush.bf16.msra.mxu1 %v4585_v58  ;;  %2710 = vmatmul.bf16.vlgmr.msrb.gmra.mxu0 %v5454_v54  ;;  %v4998_v58 = vld [vmem:[#allocation5 + $0x2cc] sm:$0xf]  ;;  %v3437_v61 = vor.u32 %v4934_v47, %v3434_v48 }
  0xbd   :  { %v5218_v1 = vld [vmem:[#allocation5 + $0x9a4] sm:$0xf0]  ;;  %v3693_v2 = vor.u32 %v4998_v58, %v3690_v59  ;;  %v3594_v43 = vld [vmem:[#allocation5 + $0x228] sm:$0xf0] }
  0xbe   :  { %v4553_v11 = vor.u32 %v5218_v1, %v4552_v63  ;;  %v4808_v13 = vld [vmem:[#allocation5 + $0xb88] sm:$0xf]  ;;  %2723 = vmatpush.bf16.msra.mxu2 %v4105_v0  ;;  %2695 = vmatpush.bf16.msra.mxu3 %v3593_v5  ;;  %v4926_v63 = vld [vmem:[#allocation5 + $0x8c] sm:$0xf] }
  0xbf   :  { %v5282_v14 = vld [vmem:[#allocation5 + $0xba4] sm:$0xf0]  ;;  %2786 = vmatpush.bf16.msrb.mxu0 %v3821_v12  ;;  %v3402_v0 = vld [vmem:[#allocation5 + $0xa8] sm:$0xf0] }
  0xc0   :  { %v4520_v15 = vld [vmem:[#allocation5 + $0x948] sm:$0xf]  ;;  %v4809_v20 = vor.u32 %v5282_v14, %v4808_v13  ;;  %2731 = vmatpush.bf16.msra.mxu1 %v4553_v11  ;;  %v3405_v10 = vor.u32 %v4926_v63, %v3402_v0  ;;  %v4918_v12 = vld [vmem:[#allocation5 + $0x4c] sm:$0xf] }
  0xc1   :  { %v5210_v16 = vld [vmem:[#allocation5 + $0x964] sm:$0xf0]  ;;  %2696 = vmatmul.bf16.vlgmr.msra.gmra.mxu3 %v5462_v8  ;;  %2724 = vmatmul.bf16.vlgmr.msra.gmra.mxu2 %v5458_v60  ;;  %v3370_v13 = vld [vmem:[#allocation5 + $0x68] sm:$0xf0] }
  0xc2   :  { %2772 = vmatpush.bf16.msrb.mxu2 %v3565_v6  ;;  %2744 = vmatpush.bf16.msrb.mxu3 %v4841_v7  ;;  %v4521_v23 = vor.u32 %v5210_v16, %v4520_v15  ;;  %v4776_v25 = vld [vmem:[#allocation5 + $0xb48] sm:$0xf]  ;;  %v4990_v7 = vld [vmem:[#allocation5 + $0x28c] sm:$0xf]  ;;  %v3373_v22 = vor.u32 %v4918_v12, %v3370_v13 }
  0xc3   :  { %v5274_v26 = vld [vmem:[#allocation5 + $0xb64] sm:$0xf0]  ;;  %2787 = vmatpush.bf16.msrb.mxu0 %v3789_v24  ;;  %v3661_v15 = vor.u32 %v4990_v7, %v3658_v9  ;;  %v4074_v24 = vld [vmem:[#allocation5 + $0x5e8] sm:$0xf0] }
  0xc4   :  { %v4488_v27 = vld [vmem:[#allocation5 + $0x908] sm:$0xf]  ;;  %v4777_v32 = vor.u32 %v5274_v26, %v4776_v25  ;;  %2732 = vmatpush.bf16.msra.mxu1 %v4521_v23  ;;  %v5094_v23 = vld [vmem:[#allocation5 + $0x5cc] sm:$0xf] }
  0xc5   :  { %v5202_v28 = vld [vmem:[#allocation5 + $0x924] sm:$0xf0]  ;;  %v4077_v34 = vor.u32 %v5094_v23, %v4074_v24  ;;  %v5078_v59 = vld [vmem:[#allocation5 + $0x54c] sm:$0xf] }
  0xc6   :  { %2773 = vmatpush.bf16.msrb.mxu2 %v3533_v19  ;;  %2745 = vmatpush.bf16.msrb.mxu3 %v4809_v20  ;;  %v4489_v35 = vor.u32 %v5202_v28, %v4488_v27  ;;  %v4744_v38 = vld [vmem:[#allocation5 + $0xb08] sm:$0xf]  ;;  %v4982_v20 = vld [vmem:[#allocation5 + $0x24c] sm:$0xf] }
  0xc7   :  { %v5266_v39 = vld [vmem:[#allocation5 + $0xb24] sm:$0xf0]  ;;  %2788 = vmatpush.bf16.msrb.mxu0 %v3757_v36  ;;  %v4910_v27 = vld [vmem:[#allocation5 + $0xc] sm:$0xf]  ;;  %v3629_v30 = vor.u32 %v4982_v20, %v3626_v21 }
  0xc8   :  { %v4456_v40 = vld [vmem:[#allocation5 + $0x8c8] sm:$0xf]  ;;  %v4745_v46 = vor.u32 %v5266_v39, %v4744_v38  ;;  %2733 = vmatpush.bf16.msra.mxu1 %v4489_v35  ;;  %v3338_v28 = vld [vmem:[#allocation5 + $0x28] sm:$0xf0] }
  0xc9   :  { %v5194_v41 = vld [vmem:[#allocation5 + $0x8e4] sm:$0xf0]  ;;  %v5222_v35 = vld [vmem:[#allocation5 + $0x9cc] sm:$0xf]  ;;  %v3341_v39 = vor.u32 %v4910_v27, %v3338_v28 }
  0xca   :  { %2774 = vmatpush.bf16.msrb.mxu2 %v3501_v31  ;;  %2746 = vmatpush.bf16.msrb.mxu3 %v4777_v32  ;;  %v4457_v49 = vor.u32 %v5194_v41, %v4456_v40  ;;  %v4712_v52 = vld [vmem:[#allocation5 + $0xac8] sm:$0xf]  ;;  %v5158_v32 = vld [vmem:[#allocation5 + $0x7cc] sm:$0xf] }
  0xcb   :  { %v5258_v53 = vld [vmem:[#allocation5 + $0xae4] sm:$0xf0]  ;;  %2789 = vmatpush.bf16.msrb.mxu0 %v3725_v51  ;;  %v4586_v36 = vld [vmem:[#allocation5 + $0x9e8] sm:$0xf0]  ;;  %v4333_v47 = vor.u32 %v5158_v32, %v4330_v33 }
  0xcc   :  { %v4424_v56 = vld [vmem:[#allocation5 + $0x888] sm:$0xf]  ;;  %v4713_v62 = vor.u32 %v5258_v53, %v4712_v52  ;;  %2734 = vmatpush.bf16.msra.mxu1 %v4457_v49  ;;  %4896 = vmatmul.msk.bf16.vlgmr.msra.gmra.mxu0 %vm2474_vm0, %v5466_v50  ;;  %v5086_v38 = vld [vmem:[#allocation5 + $0x58c] sm:$0xf]  ;;  %v4589_v48 = vor.u32 %v5222_v35, %v4586_v36 }
  0xcd   :  { %v5186_v57 = vld [vmem:[#allocation5 + $0x8a4] sm:$0xf0]  ;;  %v4042_v40 = vld [vmem:[#allocation5 + $0x5a8] sm:$0xf0] }
  0xce   :  { %2775 = vmatpush.bf16.msrb.mxu2 %v3469_v45  ;;  %2747 = vmatpush.bf16.msrb.mxu3 %v4745_v46  ;;  %v4425_v1 = vor.u32 %v5186_v57, %v4424_v56  ;;  %v4680_v3 = vld [vmem:[#allocation5 + $0xa88] sm:$0xf]  ;;  %v4974_v41 = vld [vmem:[#allocation5 + $0x20c] sm:$0xf]  ;;  %v4045_v51 = vor.u32 %v5086_v38, %v4042_v40  ;;  %v5494_v38 = vld [vmem:[#allocation7] sm:$0xff] }
  0xcf   :  { %v5250_v4 = vld [vmem:[#allocation5 + $0xaa4] sm:$0xf0]  ;;  %2790 = vmatpush.bf16.msrb.mxu0 %v3693_v2  ;;  %v5286_v45 = vld [vmem:[#allocation5 + $0xbcc] sm:$0xf]  ;;  %v3597_v52 = vor.u32 %v4974_v41, %v3594_v43 }
  0xd0   :  { %v4392_v5 = vld [vmem:[#allocation5 + $0x848] sm:$0xf]  ;;  %v4681_v11 = vor.u32 %v5250_v4, %v4680_v3  ;;  %2735 = vmatpush.bf16.msra.mxu1 %v4425_v1  ;;  %v4842_v46 = vld [vmem:[#allocation5 + $0xbe8] sm:$0xf0] }
  0xd1   :  { %v5178_v6 = vld [vmem:[#allocation5 + $0x864] sm:$0xf0]  ;;  %v5150_v49 = vld [vmem:[#allocation5 + $0x78c] sm:$0xf]  ;;  %v4845_v58 = vor.u32 %v5286_v45, %v4842_v46 }
  0xd2   :  { %2776 = vmatpush.bf16.msrb.mxu2 %v3437_v61  ;;  %2748 = vmatpush.bf16.msrb.mxu3 %v4713_v62  ;;  %v4393_v14 = vor.u32 %v5178_v6, %v4392_v5  ;;  %v4648_v16 = vld [vmem:[#allocation5 + $0xa48] sm:$0xf]  ;;  %v4298_v53 = vld [vmem:[#allocation5 + $0x7a8] sm:$0xf0] }
  0xd3   :  { %v5242_v17 = vld [vmem:[#allocation5 + $0xa64] sm:$0xf0]  ;;  %2791 = vmatpush.bf16.msrb.mxu0 %v3661_v15  ;;  %v5214_v56 = vld [vmem:[#allocation5 + $0x98c] sm:$0xf]  ;;  %v4301_v0 = vor.u32 %v5150_v49, %v4298_v53  ;;  %v463_v53 = vperm.slane %v5494_v38, 0 }
  0xd4   :  { %v4360_v18 = vld [vmem:[#allocation5 + $0x808] sm:$0xf]  ;;  %v4649_v25 = vor.u32 %v5242_v17, %v4648_v16  ;;  %2736 = vmatpush.bf16.msra.mxu1 %v4393_v14  ;;  %v4554_v57 = vld [vmem:[#allocation5 + $0x9a8] sm:$0xf0] }
  0xd5   :  { %v5170_v19 = vld [vmem:[#allocation5 + $0x824] sm:$0xf0]  ;;  %v4010_v61 = vld [vmem:[#allocation5 + $0x568] sm:$0xf0]  ;;  %v4557_v1 = vor.u32 %v5214_v56, %v4554_v57 }
  0xd6   :  { %2777 = vmatpush.bf16.msrb.mxu2 %v3405_v10  ;;  %2749 = vmatpush.bf16.msrb.mxu3 %v4681_v11  ;;  %v4616_v26 = vld [vmem:[#allocation5 + $0xa08] sm:$0xf]  ;;  %v4361_v29 = vor.u32 %v5170_v19, %v4360_v18  ;;  %v5278_v62 = vld [vmem:[#allocation5 + $0xb8c] sm:$0xf]  ;;  %v4013_v3 = vor.u32 %v5078_v59, %v4010_v61  ;;  %v2487_v59 = vpop.f32.mrf.mxu0 }
  0xd7   :  { %v5234_v31 = vld [vmem:[#allocation5 + $0xa24] sm:$0xf0]  ;;  %2792 = vmatpush.bf16.msrb.mxu0 %v3629_v30  ;;  %v4810_v63 = vld [vmem:[#allocation5 + $0xba8] sm:$0xf0] }
  0xd8   :  { %v4617_v44 = vor.u32 %v5234_v31, %v4616_v26  ;;  %2737 = vmatpush.bf16.msra.mxu1 %v4361_v29  ;;  %v5142_v2 = vld [vmem:[#allocation5 + $0x74c] sm:$0xf]  ;;  %v4813_v7 = vor.u32 %v5278_v62, %v4810_v63 }
  0xd9   :  { %v4266_v4 = vld [vmem:[#allocation5 + $0x768] sm:$0xf0] }
  0xda   :  { %2778 = vmatpush.bf16.msrb.mxu2 %v3373_v22  ;;  %2750 = vmatpush.bf16.msrb.mxu3 %v4649_v25  ;;  %v5206_v5 = vld [vmem:[#allocation5 + $0x94c] sm:$0xf]  ;;  %v4269_v13 = vor.u32 %v5142_v2, %v4266_v4 }
  0xdb   :  { %2738 = vmatmul.bf16.vlgmr.msra.gmra.mxu1 %v5470_v37  ;;  %2793 = vmatpush.bf16.msrb.mxu0 %v3597_v52  ;;  %v4522_v6 = vld [vmem:[#allocation5 + $0x968] sm:$0xf0] }
  0xdc   :  { %2800 = vmatpush.bf16.msrb.mxu1 %v4077_v34  ;;  %v5070_v9 = vld [vmem:[#allocation5 + $0x50c] sm:$0xf]  ;;  %v4525_v14 = vor.u32 %v5206_v5, %v4522_v6  ;;  %v2515_v6 = vpop.f32.mrf.mxu2 }
  0xdd   :  { %v3978_v10 = vld [vmem:[#allocation5 + $0x528] sm:$0xf0] }
  0xde   :  { %2779 = vmatpush.bf16.msrb.mxu2 %v3341_v39  ;;  %2751 = vmatpush.bf16.msrb.mxu3 %v4617_v44  ;;  %v5270_v11 = vld [vmem:[#allocation5 + $0xb4c] sm:$0xf]  ;;  %v3981_v16 = vor.u32 %v5070_v9, %v3978_v10 }
  0xdf   :  { %2842 = vmatpush.bf16.msra.mxu0 %v4845_v58  ;;  %v4778_v12 = vld [vmem:[#allocation5 + $0xb68] sm:$0xf0] }
  0xe0   :  { %2801 = vmatpush.bf16.msrb.mxu1 %v4045_v51  ;;  %v5134_v15 = vld [vmem:[#allocation5 + $0x70c] sm:$0xf]  ;;  %2794 = vmatmul.bf16.vlgmr.msrb.gmra.mxu0 %v5462_v8  ;;  %v4781_v20 = vor.u32 %v5270_v11, %v4778_v12 }
  0xe1   :  { %2752 = vmatmul.bf16.vlgmr.msrb.gmra.mxu3 %v5472_v42  ;;  %2780 = vmatmul.bf16.vlgmr.msrb.gmra.mxu2 %v5456_v55  ;;  %v4234_v17 = vld [vmem:[#allocation5 + $0x728] sm:$0xf0] }
  0xe2   :  { %2814 = vmatpush.bf16.msra.mxu3 %v4333_v47  ;;  %2828 = vmatpush.bf16.msra.mxu2 %v4589_v48  ;;  %v5198_v18 = vld [vmem:[#allocation5 + $0x90c] sm:$0xf]  ;;  %v4237_v25 = vor.u32 %v5134_v15, %v4234_v17 }
  0xe3   :  { %v4490_v19 = vld [vmem:[#allocation5 + $0x928] sm:$0xf0]  ;;  %2843 = vmatpush.bf16.msra.mxu0 %v4813_v7 }
  0xe4   :  { %2802 = vmatpush.bf16.msrb.mxu1 %v4013_v3  ;;  %v5062_v21 = vld [vmem:[#allocation5 + $0x4cc] sm:$0xf]  ;;  %v4493_v26 = vor.u32 %v5198_v18, %v4490_v19  ;;  %v2488_v18 = vadd.f32 %v2487_v59, %v463_v53  ;;  %v5155_v59 = vld [vmem:[#allocation5 + $0x7ac] sm:$0xf0] }
  0xe5   :  { %v3946_v22 = vld [vmem:[#allocation5 + $0x4e8] sm:$0xf0] }
  0xe6   :  { %2815 = vmatpush.bf16.msra.mxu3 %v4301_v0  ;;  %2829 = vmatpush.bf16.msra.mxu2 %v4557_v1  ;;  %v5262_v23 = vld [vmem:[#allocation5 + $0xb0c] sm:$0xf]  ;;  %v3949_v28 = vor.u32 %v5062_v21, %v3946_v22  ;;  %v2501_v1 = vpop.f32.mrf.mxu1  ;;  %v3568_v21 = vld [vmem:[#allocation5 + $0x1d0] sm:$0xf] }
  0xe7   :  { %v4746_v24 = vld [vmem:[#allocation5 + $0xb28] sm:$0xf0]  ;;  %2844 = vmatpush.bf16.msra.mxu0 %v4781_v20  ;;  %v4971_v22 = vld [vmem:[#allocation5 + $0x1ec] sm:$0xf0] }
  0xe8   :  { %v5126_v27 = vld [vmem:[#allocation5 + $0x6cc] sm:$0xf]  ;;  %2803 = vmatpush.bf16.msrb.mxu1 %v3981_v16  ;;  %v4749_v32 = vor.u32 %v5262_v23, %v4746_v24  ;;  %v3824_v23 = vld [vmem:[#allocation5 + $0x3d0] sm:$0xf] }
  0xe9   :  { %v4202_v29 = vld [vmem:[#allocation5 + $0x6e8] sm:$0xf0]  ;;  %v5035_v24 = vld [vmem:[#allocation5 + $0x3ec] sm:$0xf0] }
  0xea   :  { %2816 = vmatpush.bf16.msra.mxu3 %v4269_v13  ;;  %2830 = vmatpush.bf16.msra.mxu2 %v4525_v14  ;;  %v5190_v30 = vld [vmem:[#allocation5 + $0x8cc] sm:$0xf]  ;;  %v4205_v39 = vor.u32 %v5126_v27, %v4202_v29 }
  0xeb   :  { %v4458_v31 = vld [vmem:[#allocation5 + $0x8e8] sm:$0xf0]  ;;  %2845 = vmatpush.bf16.msra.mxu0 %v4749_v32  ;;  %v4336_v32 = vld [vmem:[#allocation5 + $0x7d0] sm:$0xf] }
  0xec   :  { %v5054_v33 = vld [vmem:[#allocation5 + $0x48c] sm:$0xf]  ;;  %v4461_v40 = vor.u32 %v5190_v30, %v4458_v31  ;;  %2804 = vmatpush.bf16.msrb.mxu1 %v3949_v28  ;;  %v3569_v31 = vor.u32 %v4971_v22, %v3568_v21 }
  0xed   :  { %v3914_v34 = vld [vmem:[#allocation5 + $0x4a8] sm:$0xf0] }
  0xee   :  { %v5254_v35 = vld [vmem:[#allocation5 + $0xacc] sm:$0xf]  ;;  %2817 = vmatpush.bf16.msra.mxu3 %v4237_v25  ;;  %2831 = vmatpush.bf16.msra.mxu2 %v4493_v26  ;;  %v3917_v43 = vor.u32 %v5054_v33, %v3914_v34  ;;  %v4080_v25 = vld [vmem:[#allocation5 + $0x5d0] sm:$0xf] }
  0xef   :  { %v4714_v36 = vld [vmem:[#allocation5 + $0xae8] sm:$0xf0]  ;;  %v5099_v26 = vld [vmem:[#allocation5 + $0x5ec] sm:$0xf0] }
  0xf0   :  { %v5118_v41 = vld [vmem:[#allocation5 + $0x68c] sm:$0xf]  ;;  %v4717_v47 = vor.u32 %v5254_v35, %v4714_v36  ;;  %2805 = vmatpush.bf16.msrb.mxu1 %v3917_v43  ;;  %v5163_v33 = vld [vmem:[#allocation5 + $0x7ec] sm:$0xf0]  ;;  %v2502_v35 = vadd.f32 %v2501_v1, %v2488_v18  ;;  %v3825_v36 = vor.u32 %v5035_v24, %v3824_v23 }
  0xf1   :  { %v4170_v44 = vld [vmem:[#allocation5 + $0x6a8] sm:$0xf0]  ;;  %v3536_v34 = vld [vmem:[#allocation5 + $0x190] sm:$0xf] }
  0xf2   :  { %v5182_v45 = vld [vmem:[#allocation5 + $0x88c] sm:$0xf]  ;;  %2818 = vmatpush.bf16.msra.mxu3 %v4205_v39  ;;  %2832 = vmatpush.bf16.msra.mxu2 %v4461_v40  ;;  %v4173_v56 = vor.u32 %v5118_v41, %v4170_v44  ;;  %v4081_v39 = vor.u32 %v5099_v26, %v4080_v25  ;;  %v4963_v40 = vld [vmem:[#allocation5 + $0x1ac] sm:$0xf0]  ;;  %v2489_v44 = vpop.f32.mrf.mxu0 }
  0xf3   :  { %v4426_v46 = vld [vmem:[#allocation5 + $0x8a8] sm:$0xf0]  ;;  %2846 = vmatpush.bf16.msra.mxu0 %v4717_v47  ;;  %v3792_v41 = vld [vmem:[#allocation5 + $0x390] sm:$0xf] }
  0xf4   :  { %v5046_v48 = vld [vmem:[#allocation5 + $0x44c] sm:$0xf]  ;;  %v4429_v57 = vor.u32 %v5182_v45, %v4426_v46  ;;  %v5027_v43 = vld [vmem:[#allocation5 + $0x3ac] sm:$0xf0] }
  0xf5   :  { %v3882_v49 = vld [vmem:[#allocation5 + $0x468] sm:$0xf0]  ;;  %v4048_v46 = vld [vmem:[#allocation5 + $0x590] sm:$0xf] }
  0xf6   :  { %v5246_v51 = vld [vmem:[#allocation5 + $0xa8c] sm:$0xf]  ;;  %v3885_v61 = vor.u32 %v5046_v48, %v3882_v49  ;;  %2819 = vmatpush.bf16.msra.mxu3 %v4173_v56  ;;  %2833 = vmatpush.bf16.msra.mxu2 %v4429_v57  ;;  %v5091_v47 = vld [vmem:[#allocation5 + $0x5ac] sm:$0xf0]  ;;  %v2503_v48 = vpop.f32.mrf.mxu1  ;;  %v4337_v49 = vor.u32 %v5163_v33, %v4336_v32  ;;  %v3537_v56 = vor.u32 %v4963_v40, %v3536_v34 }
  0xf7   :  { %v4682_v52 = vld [vmem:[#allocation5 + $0xaa8] sm:$0xf0]  ;;  %v3793_v57 = vor.u32 %v5027_v43, %v3792_v41  ;;  %v4955_v1 = vld [vmem:[#allocation5 + $0x16c] sm:$0xf0] }
  0xf8   :  { %v5110_v58 = vld [vmem:[#allocation5 + $0x64c] sm:$0xf]  ;;  %v4685_v2 = vor.u32 %v5246_v51, %v4682_v52  ;;  %2806 = vmatpush.bf16.msrb.mxu1 %v3885_v61  ;;  %v2529_v51 = vpop.f32.mrf.mxu3  ;;  %v2517_v52 = vpop.f32.mrf.mxu2  ;;  %v3504_v61 = vld [vmem:[#allocation5 + $0x150] sm:$0xf] }
  0xf9   :  { %v4138_v62 = vld [vmem:[#allocation5 + $0x668] sm:$0xf0]  ;;  %v3440_v32 = vld [vmem:[#allocation5 + $0xd0] sm:$0xf] }
  0xfa   :  { %v5174_v63 = vld [vmem:[#allocation5 + $0x84c] sm:$0xf]  ;;  %v4141_v11 = vor.u32 %v5110_v58, %v4138_v62  ;;  %2847 = vmatpush.bf16.msra.mxu0 %v4685_v2  ;;  %v4304_v58 = vld [vmem:[#allocation5 + $0x790] sm:$0xf]  ;;  %v2516_v62 = vadd.f32 %v2515_v6, %v2502_v35  ;;  %v3505_v6 = vor.u32 %v4955_v1, %v3504_v61  ;;  %v2543_v18 = vpop.f32.mrf.mxu0 }
  0xfb   :  { %v4394_v0 = vld [vmem:[#allocation5 + $0x868] sm:$0xf0]  ;;  %v3760_v2 = vld [vmem:[#allocation5 + $0x350] sm:$0xf] }
  0xfc   :  { %v5038_v3 = vld [vmem:[#allocation5 + $0x40c] sm:$0xf]  ;;  %v4397_v12 = vor.u32 %v5174_v63, %v4394_v0  ;;  %2820 = vmatpush.bf16.msra.mxu3 %v4141_v11  ;;  %v2490_v63 = vadd.f32 %v2489_v44, %v463_v53  ;;  %v4049_v0 = vor.u32 %v5091_v47, %v4048_v46  ;;  %v5147_v53 = vld [vmem:[#allocation5 + $0x76c] sm:$0xf0] }
  0xfd   :  { %v3850_v4 = vld [vmem:[#allocation5 + $0x428] sm:$0xf0]  ;;  %v3472_v11 = vld [vmem:[#allocation5 + $0x110] sm:$0xf] }
  0xfe   :  { %v5238_v5 = vld [vmem:[#allocation5 + $0xa4c] sm:$0xf]  ;;  %v3853_v14 = vor.u32 %v5038_v3, %v3850_v4  ;;  %2834 = vmatpush.bf16.msra.mxu2 %v4397_v12  ;;  %v5019_v3 = vld [vmem:[#allocation5 + $0x36c] sm:$0xf0]  ;;  %v2530_v12 = vadd.f32 %v2529_v51, %v2516_v62  ;;  %v2557_v22 = vpop.f32.mrf.mxu1 }
  0xff   :  { %v4650_v7 = vld [vmem:[#allocation5 + $0xa68] sm:$0xf0]  ;;  %v4016_v4 = vld [vmem:[#allocation5 + $0x550] sm:$0xf] }
 0x100   :  { %v5294_v9 = vld [vmem:[#allocation5 + $0xc0c] sm:$0xf]  ;;  %v4653_v19 = vor.u32 %v5238_v5, %v4650_v7  ;;  %2807 = vmatpush.bf16.msrb.mxu1 %v3853_v14  ;;  %v5083_v5 = vld [vmem:[#allocation5 + $0x56c] sm:$0xf0]  ;;  %v4305_v7 = vor.u32 %v5155_v59, %v4304_v58  ;;  %v2544_v21 = vadd.f32 %v2543_v18, %v2530_v12  ;;  %v2571_v24 = vpop.f32.mrf.mxu2  ;;  %v2531_v35 = vpop.f32.mrf.mxu3 }
 0x101   :  { %v4874_v10 = vld [vmem:[#allocation5 + $0xc28] sm:$0xf0]  ;;  %v4017_v14 = vor.u32 %v5083_v5, %v4016_v4  ;;  %v4939_v33 = vld [vmem:[#allocation5 + $0xec] sm:$0xf0] }
 0x102   :  { %v5102_v13 = vld [vmem:[#allocation5 + $0x60c] sm:$0xf]  ;;  %v4877_v20 = vor.u32 %v5294_v9, %v4874_v10  ;;  %2848 = vmatpush.bf16.msra.mxu0 %v4653_v19  ;;  %v3761_v9 = vor.u32 %v5019_v3, %v3760_v2  ;;  %v4272_v10 = vld [vmem:[#allocation5 + $0x750] sm:$0xf]  ;;  %v3441_v44 = vor.u32 %v4939_v33, %v3440_v32 }
 0x103   :  { %v4106_v15 = vld [vmem:[#allocation5 + $0x628] sm:$0xf0]  ;;  %2808 = vmatmul.bf16.vlgmr.msrb.gmra.mxu1 %v5454_v54  ;;  %v3984_v19 = vld [vmem:[#allocation5 + $0x510] sm:$0xf]  ;;  %v4273_v23 = vor.u32 %v5147_v53, %v4272_v10 }
 0x104   :  { %v5166_v16 = vld [vmem:[#allocation5 + $0x80c] sm:$0xf]  ;;  %v4109_v27 = vor.u32 %v5102_v13, %v4106_v15  ;;  %2863 = vmatpush.bf16.msra.mxu1 %v4877_v20  ;;  %v2504_v13 = vadd.f32 %v2503_v48, %v2490_v63  ;;  %v4947_v15 = vld [vmem:[#allocation5 + $0x12c] sm:$0xf0] }
 0x105   :  { %v4362_v17 = vld [vmem:[#allocation5 + $0x828] sm:$0xf0]  ;;  %v5075_v20 = vld [vmem:[#allocation5 + $0x52c] sm:$0xf0]  ;;  %v3473_v25 = vor.u32 %v4947_v15, %v3472_v11 }
 0x106   :  { %v5230_v28 = vld [vmem:[#allocation5 + $0xa0c] sm:$0xf]  ;;  %v4365_v30 = vor.u32 %v5166_v16, %v4362_v17  ;;  %2821 = vmatpush.bf16.msra.mxu3 %v4109_v27  ;;  %v3728_v16 = vld [vmem:[#allocation5 + $0x310] sm:$0xf]  ;;  %v2559_v63 = vpop.f32.mrf.mxu1 }
 0x107   :  { %v4618_v29 = vld [vmem:[#allocation5 + $0xa28] sm:$0xf0]  ;;  %v5011_v17 = vld [vmem:[#allocation5 + $0x32c] sm:$0xf0] }
 0x108   :  { %v4621_v45 = vor.u32 %v5230_v28, %v4618_v29  ;;  %2835 = vmatpush.bf16.msra.mxu2 %v4365_v30  ;;  %2884 = vmatpush.bf16.msrb.mxu1 %v3825_v36  ;;  %v3729_v26 = vor.u32 %v5011_v17, %v3728_v16  ;;  %v4240_v27 = vld [vmem:[#allocation5 + $0x710] sm:$0xf]  ;;  %v2518_v29 = vadd.f32 %v2517_v52, %v2504_v13  ;;  %v2573_v53 = vpop.f32.mrf.mxu2 }
 0x109   :  { %2822 = vmatmul.bf16.vlgmr.msra.gmra.mxu3 %v5458_v60  ;;  %v5139_v28 = vld [vmem:[#allocation5 + $0x72c] sm:$0xf0]  ;;  %v2558_v30 = vadd.f32 %v2557_v22, %v2544_v21 }
 0x10a   :  { %2870 = vmatpush.bf16.msrb.mxu3 %v3569_v31  ;;  %2849 = vmatpush.bf16.msra.mxu0 %v4621_v45  ;;  %v3985_v31 = vor.u32 %v5075_v20, %v3984_v19  ;;  %v3696_v34 = vld [vmem:[#allocation5 + $0x2d0] sm:$0xf]  ;;  %v4241_v43 = vor.u32 %v5139_v28, %v4240_v27  ;;  %v2532_v48 = vadd.f32 %v2531_v35, %v2518_v29  ;;  %v5507_v35 = vpop.f32.mrf.mxu3 }
 0x10b   :  { %2836 = vmatmul.bf16.vlgmr.msra.gmra.mxu2 %v5470_v37  ;;  %v5003_v36 = vld [vmem:[#allocation5 + $0x2ec] sm:$0xf0]  ;;  %v2572_v41 = vadd.f32 %v2571_v24, %v2558_v30 }
 0x10c   :  { %2898 = vmatpush.bf16.msrb.mxu2 %v4081_v39  ;;  %2885 = vmatpush.bf16.msrb.mxu1 %v3793_v57  ;;  %v3952_v39 = vld [vmem:[#allocation5 + $0x4d0] sm:$0xf]  ;;  %v2545_v57 = vpop.f32.mrf.mxu0 }
 0x10d   :  { %2850 = vmatmul.bf16.vlgmr.msra.gmra.mxu0 %v5472_v42  ;;  %v5067_v40 = vld [vmem:[#allocation5 + $0x4ec] sm:$0xf0]  ;;  %3262 = vst [vmem:[#allocation8] sm:$0xff] %v2572_v41  ;;  %v2546_v62 = vadd.f32 %v2545_v57, %v2532_v48  ;;  %v3570_v41 = vld [vmem:[#allocation5 + $0x1f0] sm:$0xf0] }
 0x10e   :  { %2912 = vmatpush.bf16.msrb.mxu0 %v4337_v49  ;;  %2871 = vmatpush.bf16.msrb.mxu3 %v3537_v56  ;;  %v4208_v45 = vld [vmem:[#allocation5 + $0x6d0] sm:$0xf]  ;;  %v3697_v49 = vor.u32 %v5003_v36, %v3696_v34  ;;  %v3953_v51 = vor.u32 %v5067_v40, %v3952_v39  ;;  %v4967_v40 = vld [vmem:[#allocation5 + $0x1d4] sm:$0xf] }
 0x10f   :  { %v5131_v46 = vld [vmem:[#allocation5 + $0x6ec] sm:$0xf0]  ;;  %v2560_v4 = vadd.f32 %v2559_v63, %v2546_v62  ;;  %v3538_v62 = vld [vmem:[#allocation5 + $0x1b0] sm:$0xf0] }
 0x110   :  { %2899 = vmatpush.bf16.msrb.mxu2 %v4049_v0  ;;  %2886 = vmatpush.bf16.msrb.mxu1 %v3761_v9  ;;  %v3408_v47 = vld [vmem:[#allocation5 + $0x90] sm:$0xf]  ;;  %v4209_v0 = vor.u32 %v5131_v46, %v4208_v45 }
 0x111   :  { %v4931_v52 = vld [vmem:[#allocation5 + $0xac] sm:$0xf0] }
 0x112   :  { %2913 = vmatpush.bf16.msrb.mxu0 %v4305_v7  ;;  %2872 = vmatpush.bf16.msrb.mxu3 %v3505_v6  ;;  %v3664_v56 = vld [vmem:[#allocation5 + $0x290] sm:$0xf]  ;;  %v3409_v1 = vor.u32 %v4931_v52, %v3408_v47  ;;  %v5031_v47 = vld [vmem:[#allocation5 + $0x3d4] sm:$0xf] }
 0x113   :  { %v4995_v58 = vld [vmem:[#allocation5 + $0x2ac] sm:$0xf0]  ;;  %4897 = vmatmul.msk.bf16.vlgmr.msra.gmra.mxu1 %vm2474_vm0, %v5466_v50 }
 0x114   :  { %2900 = vmatpush.bf16.msrb.mxu2 %v4017_v14  ;;  %2887 = vmatpush.bf16.msrb.mxu1 %v3729_v26  ;;  %v3920_v59 = vld [vmem:[#allocation5 + $0x490] sm:$0xf]  ;;  %v3665_v5 = vor.u32 %v4995_v58, %v3664_v56  ;;  %v2574_v14 = vadd.f32 %v2573_v53, %v2560_v4  ;;  %v3573_v56 = vor.u32 %v4967_v40, %v3570_v41  ;;  %v3506_v53 = vld [vmem:[#allocation5 + $0x170] sm:$0xf0] }
 0x115   :  { %v5059_v61 = vld [vmem:[#allocation5 + $0x4ac] sm:$0xf0]  ;;  %v3442_v40 = vld [vmem:[#allocation5 + $0xf0] sm:$0xf0] }
 0x116   :  { %2914 = vmatpush.bf16.msrb.mxu0 %v4273_v23  ;;  %2873 = vmatpush.bf16.msrb.mxu3 %v3473_v25  ;;  %v4176_v2 = vld [vmem:[#allocation5 + $0x690] sm:$0xf]  ;;  %v3921_v7 = vor.u32 %v5059_v61, %v3920_v59  ;;  %3270 = vst [vmem:[#allocation8 + $0x40] sm:$0xff] %v2574_v14  ;;  %v4959_v61 = vld [vmem:[#allocation5 + $0x194] sm:$0xf]  ;;  %v2599_v14 = vpop.f32.mrf.mxu2 }
 0x117   :  { %v5123_v3 = vld [vmem:[#allocation5 + $0x6ac] sm:$0xf0] }
 0x118   :  { %2901 = vmatpush.bf16.msrb.mxu2 %v3985_v31  ;;  %2888 = vmatpush.bf16.msrb.mxu1 %v3697_v49  ;;  %v3376_v6 = vld [vmem:[#allocation5 + $0x50] sm:$0xf]  ;;  %v4177_v15 = vor.u32 %v5123_v3, %v4176_v2  ;;  %v3826_v49 = vld [vmem:[#allocation5 + $0x3f0] sm:$0xf0] }
 0x119   :  { %v4923_v9 = vld [vmem:[#allocation5 + $0x6c] sm:$0xf0]  ;;  %v3829_v63 = vor.u32 %v5031_v47, %v3826_v49  ;;  %v3794_v3 = vld [vmem:[#allocation5 + $0x3b0] sm:$0xf0] }
 0x11a   :  { %2915 = vmatpush.bf16.msrb.mxu0 %v4241_v43  ;;  %2874 = vmatpush.bf16.msrb.mxu3 %v3441_v44  ;;  %v3632_v10 = vld [vmem:[#allocation5 + $0x250] sm:$0xf]  ;;  %v3377_v17 = vor.u32 %v4923_v9, %v3376_v6 }
 0x11b   :  { %v4987_v11 = vld [vmem:[#allocation5 + $0x26c] sm:$0xf0] }
 0x11c   :  { %2902 = vmatpush.bf16.msrb.mxu2 %v3953_v51  ;;  %v3888_v12 = vld [vmem:[#allocation5 + $0x450] sm:$0xf]  ;;  %2889 = vmatpush.bf16.msrb.mxu1 %v3665_v5  ;;  %v3633_v21 = vor.u32 %v4987_v11, %v3632_v10  ;;  %v4951_v10 = vld [vmem:[#allocation5 + $0x154] sm:$0xf] }
 0x11d   :  { %v5051_v13 = vld [vmem:[#allocation5 + $0x46c] sm:$0xf0] }
 0x11e   :  { %2916 = vmatpush.bf16.msrb.mxu0 %v4209_v0  ;;  %v4144_v16 = vld [vmem:[#allocation5 + $0x650] sm:$0xf]  ;;  %2875 = vmatpush.bf16.msrb.mxu3 %v3409_v1  ;;  %v3889_v22 = vor.u32 %v5051_v13, %v3888_v12  ;;  %v5023_v1 = vld [vmem:[#allocation5 + $0x394] sm:$0xf] }
 0x11f   :  { %v5115_v18 = vld [vmem:[#allocation5 + $0x66c] sm:$0xf0]  ;;  %v3797_v11 = vor.u32 %v5023_v1, %v3794_v3  ;;  %v5015_v13 = vld [vmem:[#allocation5 + $0x354] sm:$0xf]  ;;  %v2627_v1 = vpop.f32.mrf.mxu1 }
 0x120   :  { %v3344_v19 = vld [vmem:[#allocation5 + $0x10] sm:$0xf]  ;;  %2903 = vmatpush.bf16.msrb.mxu2 %v3921_v7  ;;  %v4145_v28 = vor.u32 %v5115_v18, %v4144_v16  ;;  %2890 = vmatpush.bf16.msrb.mxu1 %v3633_v21  ;;  %v3541_v7 = vor.u32 %v4959_v61, %v3538_v62  ;;  %v3410_v61 = vld [vmem:[#allocation5 + $0xb0] sm:$0xf0] }
 0x121   :  { %v4915_v20 = vld [vmem:[#allocation5 + $0x2c] sm:$0xf0]  ;;  %v3666_v3 = vld [vmem:[#allocation5 + $0x2b0] sm:$0xf0] }
 0x122   :  { %v3600_v23 = vld [vmem:[#allocation5 + $0x210] sm:$0xf]  ;;  %2917 = vmatpush.bf16.msrb.mxu0 %v4177_v15  ;;  %2876 = vmatpush.bf16.msrb.mxu3 %v3377_v17  ;;  %v3345_v32 = vor.u32 %v4915_v20, %v3344_v19  ;;  %v5512_v15 = vpop.f32.mrf.mxu3  ;;  %v3762_v17 = vld [vmem:[#allocation5 + $0x370] sm:$0xf0]  ;;  %v3509_v20 = vor.u32 %v4951_v10, %v3506_v53 }
 0x123   :  { %v4979_v24 = vld [vmem:[#allocation5 + $0x22c] sm:$0xf0] }
 0x124   :  { %v3856_v25 = vld [vmem:[#allocation5 + $0x410] sm:$0xf]  ;;  %2904 = vmatpush.bf16.msrb.mxu2 %v3889_v22  ;;  %v3601_v36 = vor.u32 %v4979_v24, %v3600_v23  ;;  %v4943_v23 = vld [vmem:[#allocation5 + $0x114] sm:$0xf] }
 0x125   :  { %v5043_v26 = vld [vmem:[#allocation5 + $0x42c] sm:$0xf0]  ;;  %v3474_v24 = vld [vmem:[#allocation5 + $0x130] sm:$0xf0] }
 0x126   :  { %v4592_v27 = vld [vmem:[#allocation5 + $0x9d0] sm:$0xf]  ;;  %v3857_v39 = vor.u32 %v5043_v26, %v3856_v25  ;;  %2918 = vmatpush.bf16.msrb.mxu0 %v4145_v28  ;;  %2877 = vmatpush.bf16.msrb.mxu3 %v3345_v32  ;;  %v464_v25 = vperm.slane %v5494_v38, 1  ;;  %v3765_v26 = vor.u32 %v5015_v13, %v3762_v17  ;;  %v5007_v28 = vld [vmem:[#allocation5 + $0x314] sm:$0xf] }
 0x127   :  { %v5227_v29 = vld [vmem:[#allocation5 + $0x9ec] sm:$0xf0]  ;;  %2891 = vmatpush.bf16.msrb.mxu1 %v3601_v36  ;;  %v3634_v17 = vld [vmem:[#allocation5 + $0x270] sm:$0xf0] }
 0x128   :  { %v4848_v30 = vld [vmem:[#allocation5 + $0xbd0] sm:$0xf]  ;;  %v4593_v43 = vor.u32 %v5227_v29, %v4592_v27  ;;  %2905 = vmatpush.bf16.msrb.mxu2 %v3857_v39  ;;  %v4935_v39 = vld [vmem:[#allocation5 + $0xd4] sm:$0xf]  ;;  %v2586_v41 = vadd.f32 %v5507_v35, %v464_v25  ;;  %v2588_v53 = vadd.f32 %v5512_v15, %v464_v25 }
 0x129   :  { %v5291_v31 = vld [vmem:[#allocation5 + $0xbec] sm:$0xf0]  ;;  %2878 = vmatmul.bf16.vlgmr.msrb.gmra.mxu3 %v5456_v55  ;;  %v5095_v15 = vld [vmem:[#allocation5 + $0x5d4] sm:$0xf] }
 0x12a   :  { %v4112_v33 = vld [vmem:[#allocation5 + $0x610] sm:$0xf]  ;;  %v4849_v44 = vor.u32 %v5291_v31, %v4848_v30  ;;  %2926 = vmatpush.bf16.msra.mxu3 %v4593_v43  ;;  %2892 = vmatmul.bf16.vlgmr.msrb.gmra.mxu1 %v5462_v8  ;;  %v3730_v30 = vld [vmem:[#allocation5 + $0x330] sm:$0xf0]  ;;  %v2600_v35 = vadd.f32 %v2599_v14, %v2586_v41 }
 0x12b   :  { %v5107_v34 = vld [vmem:[#allocation5 + $0x62c] sm:$0xf0]  ;;  %2906 = vmatmul.bf16.vlgmr.msrb.gmra.mxu2 %v5454_v54  ;;  %v3733_v38 = vor.u32 %v5007_v28, %v3730_v30  ;;  %v4082_v25 = vld [vmem:[#allocation5 + $0x5f0] sm:$0xf0] }
 0x12c   :  { %v4880_v45 = vld [vmem:[#allocation5 + $0xc10] sm:$0xf]  ;;  %v4113_v48 = vor.u32 %v5107_v34, %v4112_v33  ;;  %2940 = vmatpush.bf16.msra.mxu1 %v4849_v44  ;;  %v3477_v33 = vor.u32 %v4943_v23, %v3474_v24  ;;  %v4999_v44 = vld [vmem:[#allocation5 + $0x2d4] sm:$0xf] }
 0x12d   :  { %v5299_v46 = vld [vmem:[#allocation5 + $0xc2c] sm:$0xf0]  ;;  %v4594_v41 = vld [vmem:[#allocation5 + $0x9f0] sm:$0xf0] }
 0x12e   :  { %v4560_v51 = vld [vmem:[#allocation5 + $0x990] sm:$0xf]  ;;  %v4881_v59 = vor.u32 %v5299_v46, %v4880_v45  ;;  %2919 = vmatpush.bf16.msrb.mxu0 %v4113_v48  ;;  %v2613_v45 = vpop.f32.mrf.mxu0  ;;  %v2641_v46 = vpop.f32.mrf.mxu3  ;;  %v3698_v48 = vld [vmem:[#allocation5 + $0x2f0] sm:$0xf0] }
 0x12f   :  { %v5219_v52 = vld [vmem:[#allocation5 + $0x9ac] sm:$0xf0]  ;;  %v3701_v62 = vor.u32 %v4999_v44, %v3698_v48  ;;  %v4975_v44 = vld [vmem:[#allocation5 + $0x214] sm:$0xf] }
 0x130   :  { %v4816_v57 = vld [vmem:[#allocation5 + $0xb90] sm:$0xf]  ;;  %v4561_v0 = vor.u32 %v5219_v52, %v4560_v51  ;;  %2961 = vmatpush.bf16.msra.mxu2 %v4881_v59  ;;  %v3445_v52 = vor.u32 %v4935_v39, %v3442_v40  ;;  %v4927_v59 = vld [vmem:[#allocation5 + $0x94] sm:$0xf] }
 0x131   :  { %v5283_v58 = vld [vmem:[#allocation5 + $0xbac] sm:$0xf0]  ;;  %2920 = vmatmul.bf16.vlgmr.msrb.gmra.mxu0 %v5458_v60  ;;  %v5223_v40 = vld [vmem:[#allocation5 + $0x9d4] sm:$0xf] }
 0x132   :  { %v4817_v2 = vor.u32 %v5283_v58, %v4816_v57  ;;  %v4528_v4 = vld [vmem:[#allocation5 + $0x950] sm:$0xf]  ;;  %2968 = vmatpush.bf16.msra.mxu0 %v3573_v56  ;;  %2927 = vmatpush.bf16.msra.mxu3 %v4561_v0  ;;  %v2601_v58 = vpop.f32.mrf.mxu2  ;;  %v4991_v0 = vld [vmem:[#allocation5 + $0x294] sm:$0xf] }
 0x133   :  { %v5211_v5 = vld [vmem:[#allocation5 + $0x96c] sm:$0xf0]  ;;  %v3669_v13 = vor.u32 %v4991_v0, %v3666_v3  ;;  %v2602_v28 = vadd.f32 %v2601_v58, %v2588_v53  ;;  %v4597_v58 = vor.u32 %v5223_v40, %v4594_v41  ;;  %v4562_v0 = vld [vmem:[#allocation5 + $0x9b0] sm:$0xf0] }
 0x134   :  { %v4784_v6 = vld [vmem:[#allocation5 + $0xb50] sm:$0xf]  ;;  %2982 = vmatpush.bf16.msrb.mxu2 %v3829_v63  ;;  %v4529_v12 = vor.u32 %v5211_v5, %v4528_v4  ;;  %2941 = vmatpush.bf16.msra.mxu1 %v4817_v2  ;;  %v4018_v53 = vld [vmem:[#allocation5 + $0x570] sm:$0xf0] }
 0x135   :  { %v5275_v9 = vld [vmem:[#allocation5 + $0xb6c] sm:$0xf0]  ;;  %v4754_v40 = vld [vmem:[#allocation5 + $0xb30] sm:$0xf0] }
 0x136   :  { %v4785_v16 = vor.u32 %v5275_v9, %v4784_v6  ;;  %v4496_v18 = vld [vmem:[#allocation5 + $0x910] sm:$0xf]  ;;  %2969 = vmatpush.bf16.msra.mxu0 %v3541_v7  ;;  %2928 = vmatpush.bf16.msra.mxu3 %v4529_v12  ;;  %v2614_v7 = vadd.f32 %v2613_v45, %v2600_v35  ;;  %v3413_v6 = vor.u32 %v4927_v59, %v3410_v61  ;;  %v3378_v12 = vld [vmem:[#allocation5 + $0x70] sm:$0xf0] }
 0x137   :  { %v5203_v19 = vld [vmem:[#allocation5 + $0x92c] sm:$0xf0]  ;;  %v3602_v45 = vld [vmem:[#allocation5 + $0x230] sm:$0xf0] }
 0x138   :  { %v4752_v21 = vld [vmem:[#allocation5 + $0xb10] sm:$0xf]  ;;  %2983 = vmatpush.bf16.msrb.mxu2 %v3797_v11  ;;  %v4497_v27 = vor.u32 %v5203_v19, %v4496_v18  ;;  %2942 = vmatpush.bf16.msra.mxu1 %v4785_v16  ;;  %v4919_v11 = vld [vmem:[#allocation5 + $0x54] sm:$0xf]  ;;  %v5520_v19 = vpop.f32.mrf.mxu3  ;;  %v2628_v24 = vadd.f32 %v2627_v1, %v2614_v7 }
 0x139   :  { %v5267_v22 = vld [vmem:[#allocation5 + $0xb2c] sm:$0xf0]  ;;  %v4983_v16 = vld [vmem:[#allocation5 + $0x254] sm:$0xf] }
 0x13a   :  { %v4753_v29 = vor.u32 %v5267_v22, %v4752_v21  ;;  %v4464_v31 = vld [vmem:[#allocation5 + $0x8d0] sm:$0xf]  ;;  %2970 = vmatpush.bf16.msra.mxu0 %v3509_v20  ;;  %2929 = vmatpush.bf16.msra.mxu3 %v4497_v27  ;;  %v5159_v27 = vld [vmem:[#allocation5 + $0x7d4] sm:$0xf]  ;;  %v2655_v30 = vpop.f32.mrf.mxu2 }
 0x13b   :  { %v5195_v32 = vld [vmem:[#allocation5 + $0x8ec] sm:$0xf0]  ;;  %4898 = vmatmul.msk.bf16.vlgmr.msra.gmra.mxu2 %vm2474_vm0, %v5466_v50  ;;  %v5151_v59 = vld [vmem:[#allocation5 + $0x794] sm:$0xf] }
 0x13c   :  { %v4720_v34 = vld [vmem:[#allocation5 + $0xad0] sm:$0xf]  ;;  %2984 = vmatpush.bf16.msrb.mxu2 %v3765_v26  ;;  %v4465_v43 = vor.u32 %v5195_v32, %v4464_v31  ;;  %2943 = vmatpush.bf16.msra.mxu1 %v4753_v29  ;;  %v3381_v26 = vor.u32 %v4919_v11, %v3378_v12  ;;  %v2615_v29 = vpop.f32.mrf.mxu0  ;;  %v4338_v31 = vld [vmem:[#allocation5 + $0x7f0] sm:$0xf0] }
 0x13d   :  { %v5259_v36 = vld [vmem:[#allocation5 + $0xaec] sm:$0xf0]  ;;  %v4911_v32 = vld [vmem:[#allocation5 + $0x14] sm:$0xf]  ;;  %v2616_v48 = vadd.f32 %v2615_v29, %v2602_v28 }
 0x13e   :  { %v4721_v47 = vor.u32 %v5259_v36, %v4720_v34  ;;  %v4432_v49 = vld [vmem:[#allocation5 + $0x890] sm:$0xf]  ;;  %2971 = vmatpush.bf16.msra.mxu0 %v3477_v33  ;;  %2930 = vmatpush.bf16.msra.mxu3 %v4465_v43  ;;  %v3346_v33 = vld [vmem:[#allocation5 + $0x30] sm:$0xf0]  ;;  %v2642_v34 = vadd.f32 %v2641_v46, %v2628_v24  ;;  %v3637_v36 = vor.u32 %v4983_v16, %v3634_v17  ;;  %v2629_v46 = vpop.f32.mrf.mxu1 }
 0x13f   :  { %v5187_v51 = vld [vmem:[#allocation5 + $0x8ac] sm:$0xf0]  ;;  %v4085_v43 = vor.u32 %v5095_v15, %v4082_v25  ;;  %v4306_v61 = vld [vmem:[#allocation5 + $0x7b0] sm:$0xf0] }
 0x140   :  { %v4688_v56 = vld [vmem:[#allocation5 + $0xa90] sm:$0xf]  ;;  %2985 = vmatpush.bf16.msrb.mxu2 %v3733_v38  ;;  %v4433_v63 = vor.u32 %v5187_v51, %v4432_v49  ;;  %2944 = vmatpush.bf16.msra.mxu1 %v4721_v47  ;;  %v5287_v47 = vld [vmem:[#allocation5 + $0xbd4] sm:$0xf]  ;;  %v4341_v49 = vor.u32 %v5159_v27, %v4338_v31  ;;  %v3349_v51 = vor.u32 %v4911_v32, %v3346_v33  ;;  %v2669_v1 = vpop.f32.mrf.mxu3 }
 0x141   :  { %v5251_v57 = vld [vmem:[#allocation5 + $0xaac] sm:$0xf0]  ;;  %v2656_v35 = vadd.f32 %v2655_v30, %v2642_v34  ;;  %v5143_v12 = vld [vmem:[#allocation5 + $0x754] sm:$0xf] }
 0x142   :  { %v4689_v2 = vor.u32 %v5251_v57, %v4688_v56  ;;  %v4400_v4 = vld [vmem:[#allocation5 + $0x850] sm:$0xf]  ;;  %2972 = vmatpush.bf16.msra.mxu0 %v3445_v52  ;;  %2931 = vmatpush.bf16.msra.mxu3 %v4433_v63  ;;  %v4850_v52 = vld [vmem:[#allocation5 + $0xbf0] sm:$0xf0] }
 0x143   :  { %v5179_v5 = vld [vmem:[#allocation5 + $0x86c] sm:$0xf0]  ;;  %v5087_v56 = vld [vmem:[#allocation5 + $0x594] sm:$0xf]  ;;  %v2670_v7 = vadd.f32 %v2669_v1, %v2656_v35 }
 0x144   :  { %v4656_v9 = vld [vmem:[#allocation5 + $0xa50] sm:$0xf]  ;;  %2986 = vmatpush.bf16.msrb.mxu2 %v3701_v62  ;;  %v4401_v14 = vor.u32 %v5179_v5, %v4400_v4  ;;  %2945 = vmatpush.bf16.msra.mxu1 %v4689_v2  ;;  %v4050_v57 = vld [vmem:[#allocation5 + $0x5b0] sm:$0xf0]  ;;  %v3605_v62 = vor.u32 %v4975_v44, %v3602_v45  ;;  %v4853_v2 = vor.u32 %v5287_v47, %v4850_v52 }
 0x145   :  { %v5243_v10 = vld [vmem:[#allocation5 + $0xa6c] sm:$0xf0]  ;;  %v5215_v63 = vld [vmem:[#allocation5 + $0x994] sm:$0xf]  ;;  %v4053_v3 = vor.u32 %v5087_v56, %v4050_v57  ;;  %v2630_v5 = vadd.f32 %v2629_v46, %v2616_v48  ;;  %3263 = vst [vmem:[#allocation8 + $0x8] sm:$0xff] %v2670_v7 }
 0x146   :  { %v4368_v18 = vld [vmem:[#allocation5 + $0x810] sm:$0xf]  ;;  %v4657_v20 = vor.u32 %v5243_v10, %v4656_v9  ;;  %2973 = vmatpush.bf16.msra.mxu0 %v3413_v6  ;;  %2932 = vmatpush.bf16.msra.mxu3 %v4401_v14  ;;  %v5279_v4 = vld [vmem:[#allocation5 + $0xb94] sm:$0xf]  ;;  %v4309_v6 = vor.u32 %v5151_v59, %v4306_v61  ;;  %v4565_v11 = vor.u32 %v5215_v63, %v4562_v0 }
 0x147   :  { %v5171_v21 = vld [vmem:[#allocation5 + $0x82c] sm:$0xf0]  ;;  %v4818_v9 = vld [vmem:[#allocation5 + $0xbb0] sm:$0xf0]  ;;  %v2644_v14 = vadd.f32 %v5520_v19, %v2630_v5 }
 0x148   :  { %v4624_v22 = vld [vmem:[#allocation5 + $0xa10] sm:$0xf]  ;;  %2987 = vmatpush.bf16.msrb.mxu2 %v3669_v13  ;;  %v4369_v39 = vor.u32 %v5171_v21, %v4368_v18  ;;  %2946 = vmatpush.bf16.msra.mxu1 %v4657_v20  ;;  %v5079_v10 = vld [vmem:[#allocation5 + $0x554] sm:$0xf]  ;;  %v2657_v18 = vpop.f32.mrf.mxu2  ;;  %v4821_v20 = vor.u32 %v5279_v4, %v4818_v9  ;;  %v2671_v31 = vpop.f32.mrf.mxu3 }
 0x149   :  { %v5235_v23 = vld [vmem:[#allocation5 + $0xa2c] sm:$0xf0]  ;;  %v4274_v13 = vld [vmem:[#allocation5 + $0x770] sm:$0xf0]  ;;  %v4021_v21 = vor.u32 %v5079_v10, %v4018_v53  ;;  %v2658_v28 = vadd.f32 %v2657_v18, %v2644_v14 }
 0x14a   :  { %v4625_v38 = vor.u32 %v5235_v23, %v4624_v22  ;;  %2974 = vmatpush.bf16.msra.mxu0 %v3381_v26  ;;  %2933 = vmatpush.bf16.msra.mxu3 %v4369_v39  ;;  %v5207_v16 = vld [vmem:[#allocation5 + $0x954] sm:$0xf]  ;;  %v4277_v23 = vor.u32 %v5143_v12, %v4274_v13 }
 0x14b   :  { %v4530_v17 = vld [vmem:[#allocation5 + $0x970] sm:$0xf0] }
 0x14c   :  { %2988 = vmatpush.bf16.msrb.mxu2 %v3637_v36  ;;  %2947 = vmatpush.bf16.msra.mxu1 %v4625_v38  ;;  %v5271_v22 = vld [vmem:[#allocation5 + $0xb54] sm:$0xf]  ;;  %v4533_v19 = vor.u32 %v5207_v16, %v4530_v17  ;;  %v2672_v36 = vadd.f32 %v2671_v31, %v2658_v28 }
 0x14d   :  { %2934 = vmatmul.bf16.vlgmr.msra.gmra.mxu3 %v5470_v37  ;;  %v4786_v24 = vld [vmem:[#allocation5 + $0xb70] sm:$0xf0] }
 0x14e   :  { %2996 = vmatpush.bf16.msrb.mxu3 %v4085_v43  ;;  %2975 = vmatpush.bf16.msra.mxu0 %v3349_v51  ;;  %v5071_v26 = vld [vmem:[#allocation5 + $0x514] sm:$0xf]  ;;  %v4789_v32 = vor.u32 %v5271_v22, %v4786_v24  ;;  %3271 = vst [vmem:[#allocation8 + $0x48] sm:$0xff] %v2672_v36 }
 0x14f   :  { %2948 = vmatmul.bf16.vlgmr.msra.gmra.mxu1 %v5472_v42  ;;  %v3986_v15 = vld [vmem:[#allocation5 + $0x530] sm:$0xf0] }
 0x150   :  { %3010 = vmatpush.bf16.msrb.mxu1 %v4341_v49  ;;  %2989 = vmatpush.bf16.msrb.mxu2 %v3605_v62  ;;  %v5135_v25 = vld [vmem:[#allocation5 + $0x714] sm:$0xf]  ;;  %v3989_v33 = vor.u32 %v5071_v26, %v3986_v15  ;;  %v3576_v15 = vld [vmem:[#allocation5 + $0x1d8] sm:$0xf] }
 0x151   :  { %2976 = vmatmul.bf16.vlgmr.msra.gmra.mxu0 %v5456_v55  ;;  %v4242_v27 = vld [vmem:[#allocation5 + $0x730] sm:$0xf0] }
 0x152   :  { %3024 = vmatpush.bf16.msrb.mxu0 %v4597_v58  ;;  %2997 = vmatpush.bf16.msrb.mxu3 %v4053_v3  ;;  %v5199_v29 = vld [vmem:[#allocation5 + $0x914] sm:$0xf]  ;;  %v4245_v39 = vor.u32 %v5135_v25, %v4242_v27  ;;  %v4972_v27 = vld [vmem:[#allocation5 + $0x1f4] sm:$0xf0] }
 0x153   :  { %2990 = vmatmul.bf16.vlgmr.msrb.gmra.mxu2 %v5462_v8  ;;  %v4498_v30 = vld [vmem:[#allocation5 + $0x930] sm:$0xf0] }
 0x154   :  { %3038 = vmatpush.bf16.msra.mxu2 %v4853_v2  ;;  %3011 = vmatpush.bf16.msrb.mxu1 %v4309_v6  ;;  %v5263_v34 = vld [vmem:[#allocation5 + $0xb14] sm:$0xf]  ;;  %v4501_v43 = vor.u32 %v5199_v29, %v4498_v30  ;;  %v5527_v6 = vpop.f32.mrf.mxu0 }
 0x155   :  { %v5063_v41 = vld [vmem:[#allocation5 + $0x4d4] sm:$0xf]  ;;  %v4757_v49 = vor.u32 %v5263_v34, %v4754_v40  ;;  %v5100_v34 = vld [vmem:[#allocation5 + $0x5f4] sm:$0xf0] }
 0x156   :  { %3025 = vmatpush.bf16.msrb.mxu0 %v4565_v11  ;;  %2998 = vmatpush.bf16.msrb.mxu3 %v4021_v21  ;;  %v3954_v38 = vld [vmem:[#allocation5 + $0x4f0] sm:$0xf0] }
 0x157   :  { %v5127_v44 = vld [vmem:[#allocation5 + $0x6d4] sm:$0xf]  ;;  %v3957_v51 = vor.u32 %v5063_v41, %v3954_v38  ;;  %v3832_v41 = vld [vmem:[#allocation5 + $0x3d8] sm:$0xf] }
 0x158   :  { %3039 = vmatpush.bf16.msra.mxu2 %v4821_v20  ;;  %3012 = vmatpush.bf16.msrb.mxu1 %v4277_v23  ;;  %v4210_v45 = vld [vmem:[#allocation5 + $0x6f0] sm:$0xf0]  ;;  %v2683_v20 = vpop.f32.mrf.mxu1  ;;  %v5036_v38 = vld [vmem:[#allocation5 + $0x3f4] sm:$0xf0] }
 0x159   :  { %v5191_v47 = vld [vmem:[#allocation5 + $0x8d4] sm:$0xf]  ;;  %v4213_v56 = vor.u32 %v5127_v44, %v4210_v45  ;;  %v3577_v45 = vor.u32 %v4972_v27, %v3576_v15  ;;  %v2725_v27 = vpop.f32.mrf.mxu2 }
 0x15a   :  { %3026 = vmatpush.bf16.msrb.mxu0 %v4533_v19  ;;  %v4466_v48 = vld [vmem:[#allocation5 + $0x8f0] sm:$0xf0]  ;;  %2999 = vmatpush.bf16.msrb.mxu3 %v3989_v33  ;;  %v4088_v33 = vld [vmem:[#allocation5 + $0x5d8] sm:$0xf] }
 0x15b   :  { %v5255_v52 = vld [vmem:[#allocation5 + $0xad4] sm:$0xf]  ;;  %v4469_v59 = vor.u32 %v5191_v47, %v4466_v48  ;;  %v4344_v48 = vld [vmem:[#allocation5 + $0x7d8] sm:$0xf] }
 0x15c   :  { %3040 = vmatpush.bf16.msra.mxu2 %v4789_v32  ;;  %3013 = vmatpush.bf16.msrb.mxu1 %v4245_v39  ;;  %v4722_v57 = vld [vmem:[#allocation5 + $0xaf0] sm:$0xf0] }
 0x15d   :  { %v5055_v46 = vld [vmem:[#allocation5 + $0x494] sm:$0xf]  ;;  %v4725_v0 = vor.u32 %v5255_v52, %v4722_v57  ;;  %v4089_v52 = vor.u32 %v5100_v34, %v4088_v33  ;;  %v4964_v57 = vld [vmem:[#allocation5 + $0x1b4] sm:$0xf0] }
 0x15e   :  { %v3922_v58 = vld [vmem:[#allocation5 + $0x4b0] sm:$0xf0]  ;;  %3027 = vmatpush.bf16.msrb.mxu0 %v4501_v43  ;;  %3000 = vmatpush.bf16.msrb.mxu3 %v3957_v51  ;;  %v5529_v43 = vld [vmem:[#allocation7] sm:$0xff]  ;;  %v2697_v51 = vpop.f32.mrf.mxu3 }
 0x15f   :  { %v5119_v61 = vld [vmem:[#allocation5 + $0x694] sm:$0xf]  ;;  %v3925_v1 = vor.u32 %v5055_v46, %v3922_v58  ;;  %v465_v44 = vperm.slane %v5529_v43, 2  ;;  %v5532_v46 = vpop.f32.mrf.mxu0 }
 0x160   :  { %v4178_v35 = vld [vmem:[#allocation5 + $0x6b0] sm:$0xf0]  ;;  %3041 = vmatpush.bf16.msra.mxu2 %v4757_v49  ;;  %3014 = vmatpush.bf16.msrb.mxu1 %v4213_v56  ;;  %v5164_v49 = vld [vmem:[#allocation5 + $0x7f4] sm:$0xf0] }
 0x161   :  { %v5183_v62 = vld [vmem:[#allocation5 + $0x894] sm:$0xf]  ;;  %v4181_v3 = vor.u32 %v5119_v61, %v4178_v35  ;;  %v3544_v56 = vld [vmem:[#allocation5 + $0x198] sm:$0xf] }
 0x162   :  { %v4434_v63 = vld [vmem:[#allocation5 + $0x8b0] sm:$0xf0]  ;;  %3028 = vmatpush.bf16.msrb.mxu0 %v4469_v59  ;;  %3001 = vmatpush.bf16.msrb.mxu3 %v3925_v1  ;;  %v3833_v59 = vor.u32 %v5036_v38, %v3832_v41  ;;  %v4056_v61 = vld [vmem:[#allocation5 + $0x598] sm:$0xf]  ;;  %v2684_v1 = vadd.f32 %v2683_v20, %v465_v44 }
 0x163   :  { %v5247_v2 = vld [vmem:[#allocation5 + $0xa94] sm:$0xf]  ;;  %v4437_v9 = vor.u32 %v5183_v62, %v4434_v63  ;;  %v5092_v35 = vld [vmem:[#allocation5 + $0x5b4] sm:$0xf0]  ;;  %v4345_v62 = vor.u32 %v5164_v49, %v4344_v48 }
 0x164   :  { %v4690_v4 = vld [vmem:[#allocation5 + $0xab0] sm:$0xf0]  ;;  %3042 = vmatpush.bf16.msra.mxu2 %v4725_v0  ;;  %3015 = vmatpush.bf16.msrb.mxu1 %v4181_v3  ;;  %v3800_v63 = vld [vmem:[#allocation5 + $0x398] sm:$0xf] }
 0x165   :  { %v5047_v5 = vld [vmem:[#allocation5 + $0x454] sm:$0xf]  ;;  %v4693_v13 = vor.u32 %v5247_v2, %v4690_v4  ;;  %v5028_v0 = vld [vmem:[#allocation5 + $0x3b4] sm:$0xf0]  ;;  %v3545_v2 = vor.u32 %v4964_v57, %v3544_v56 }
 0x166   :  { %v3890_v7 = vld [vmem:[#allocation5 + $0x470] sm:$0xf0]  ;;  %3029 = vmatpush.bf16.msrb.mxu0 %v4437_v9  ;;  %v4312_v3 = vld [vmem:[#allocation5 + $0x798] sm:$0xf] }
 0x167   :  { %v5111_v10 = vld [vmem:[#allocation5 + $0x654] sm:$0xf]  ;;  %v3893_v14 = vor.u32 %v5047_v5, %v3890_v7  ;;  %v5156_v4 = vld [vmem:[#allocation5 + $0x7b4] sm:$0xf0]  ;;  %v2685_v5 = vpop.f32.mrf.mxu1  ;;  %v4057_v7 = vor.u32 %v5092_v35, %v4056_v61  ;;  %v2767_v15 = vpop.f32.mrf.mxu0 }
 0x168   :  { %v4146_v53 = vld [vmem:[#allocation5 + $0x670] sm:$0xf0]  ;;  %3043 = vmatpush.bf16.msra.mxu2 %v4693_v13  ;;  %v3512_v9 = vld [vmem:[#allocation5 + $0x158] sm:$0xf]  ;;  %v4313_v13 = vor.u32 %v5156_v4, %v4312_v3  ;;  %v2686_v33 = vadd.f32 %v2685_v5, %v465_v44 }
 0x169   :  { %v5175_v11 = vld [vmem:[#allocation5 + $0x854] sm:$0xf]  ;;  %v4149_v21 = vor.u32 %v5111_v10, %v4146_v53  ;;  %3002 = vmatpush.bf16.msrb.mxu3 %v3893_v14  ;;  %v4956_v10 = vld [vmem:[#allocation5 + $0x174] sm:$0xf0]  ;;  %v3801_v53 = vor.u32 %v5028_v0, %v3800_v63 }
 0x16a   :  { %v4402_v12 = vld [vmem:[#allocation5 + $0x870] sm:$0xf0]  ;;  %v3768_v14 = vld [vmem:[#allocation5 + $0x358] sm:$0xf] }
 0x16b   :  { %v5239_v16 = vld [vmem:[#allocation5 + $0xa54] sm:$0xf]  ;;  %v4405_v26 = vor.u32 %v5175_v11, %v4402_v12  ;;  %3016 = vmatpush.bf16.msrb.mxu1 %v4149_v21  ;;  %v4024_v11 = vld [vmem:[#allocation5 + $0x558] sm:$0xf] }
 0x16c   :  { %v4658_v17 = vld [vmem:[#allocation5 + $0xa70] sm:$0xf0]  ;;  %v5084_v12 = vld [vmem:[#allocation5 + $0x574] sm:$0xf0] }
 0x16d   :  { %v5039_v18 = vld [vmem:[#allocation5 + $0x414] sm:$0xf]  ;;  %v4661_v30 = vor.u32 %v5239_v16, %v4658_v17  ;;  %3030 = vmatpush.bf16.msrb.mxu0 %v4405_v26  ;;  %v5020_v16 = vld [vmem:[#allocation5 + $0x374] sm:$0xf0]  ;;  %v2698_v17 = vadd.f32 %v2697_v51, %v2684_v1 }
 0x16e   :  { %v3858_v22 = vld [vmem:[#allocation5 + $0x430] sm:$0xf0]  ;;  %v4280_v20 = vld [vmem:[#allocation5 + $0x758] sm:$0xf]  ;;  %v3769_v26 = vor.u32 %v5020_v16, %v3768_v14  ;;  %v2727_v14 = vpop.f32.mrf.mxu2 }
 0x16f   :  { %v5103_v23 = vld [vmem:[#allocation5 + $0x614] sm:$0xf]  ;;  %v3861_v31 = vor.u32 %v5039_v18, %v3858_v22  ;;  %3044 = vmatpush.bf16.msra.mxu2 %v4661_v30  ;;  %v3513_v18 = vor.u32 %v4956_v10, %v3512_v9  ;;  %v5148_v21 = vld [vmem:[#allocation5 + $0x774] sm:$0xf0]  ;;  %v4025_v22 = vor.u32 %v5084_v12, %v4024_v11 }
 0x170   :  { %v4114_v24 = vld [vmem:[#allocation5 + $0x630] sm:$0xf0]  ;;  %v3736_v30 = vld [vmem:[#allocation5 + $0x318] sm:$0xf] }
 0x171   :  { %v5295_v19 = vld [vmem:[#allocation5 + $0xc14] sm:$0xf]  ;;  %v4117_v36 = vor.u32 %v5103_v23, %v4114_v24  ;;  %3003 = vmatpush.bf16.msrb.mxu3 %v3861_v31  ;;  %v3480_v23 = vld [vmem:[#allocation5 + $0x118] sm:$0xf] }
 0x172   :  { %v4882_v25 = vld [vmem:[#allocation5 + $0xc30] sm:$0xf0]  ;;  %v4948_v24 = vld [vmem:[#allocation5 + $0x134] sm:$0xf0] }
 0x173   :  { %v5167_v28 = vld [vmem:[#allocation5 + $0x814] sm:$0xf]  ;;  %v4885_v40 = vor.u32 %v5295_v19, %v4882_v25  ;;  %3017 = vmatpush.bf16.msrb.mxu1 %v4117_v36  ;;  %v3992_v19 = vld [vmem:[#allocation5 + $0x518] sm:$0xf]  ;;  %v3481_v34 = vor.u32 %v4948_v24, %v3480_v23 }
 0x174   :  { %v4370_v29 = vld [vmem:[#allocation5 + $0x830] sm:$0xf0]  ;;  %3004 = vmatmul.bf16.vlgmr.msrb.gmra.mxu3 %v5454_v54  ;;  %v5076_v25 = vld [vmem:[#allocation5 + $0x534] sm:$0xf0] }
 0x175   :  { %v5231_v32 = vld [vmem:[#allocation5 + $0xa14] sm:$0xf]  ;;  %v4373_v47 = vor.u32 %v5167_v28, %v4370_v29  ;;  %3059 = vmatpush.bf16.msra.mxu3 %v4885_v40  ;;  %v2699_v28 = vpop.f32.mrf.mxu3  ;;  %v4281_v29 = vor.u32 %v5148_v21, %v4280_v20  ;;  %v5012_v31 = vld [vmem:[#allocation5 + $0x334] sm:$0xf0]  ;;  %v2739_v40 = vpop.f32.mrf.mxu1  ;;  %v3993_v41 = vor.u32 %v5076_v25, %v3992_v19 }
 0x176   :  { %v4626_v39 = vld [vmem:[#allocation5 + $0xa30] sm:$0xf0]  ;;  %3018 = vmatmul.bf16.vlgmr.msrb.gmra.mxu1 %v5458_v60  ;;  %v4248_v36 = vld [vmem:[#allocation5 + $0x718] sm:$0xf]  ;;  %v2700_v57 = vadd.f32 %v2699_v28, %v2686_v33 }
 0x177   :  { %v4629_v58 = vor.u32 %v5231_v32, %v4626_v39  ;;  %3066 = vmatpush.bf16.msra.mxu1 %v3577_v45  ;;  %3031 = vmatpush.bf16.msrb.mxu0 %v4373_v47  ;;  %v2712_v32 = vadd.f32 %v5527_v6, %v2698_v17  ;;  %v5140_v39 = vld [vmem:[#allocation5 + $0x734] sm:$0xf0]  ;;  %v3737_v47 = vor.u32 %v5012_v31, %v3736_v30 }
 0x178   :  { %v3448_v38 = vld [vmem:[#allocation5 + $0xd8] sm:$0xf]  ;;  %v4249_v51 = vor.u32 %v5140_v39, %v4248_v36  ;;  %v2714_v9 = vadd.f32 %v5532_v46, %v2700_v57 }
 0x179   :  { %3045 = vmatpush.bf16.msra.mxu2 %v4629_v58  ;;  %3080 = vmatpush.bf16.msrb.mxu3 %v3833_v59  ;;  %v4940_v45 = vld [vmem:[#allocation5 + $0xf4] sm:$0xf0]  ;;  %v2726_v56 = vadd.f32 %v2725_v27, %v2712_v32 }
 0x17a   :  { %3032 = vmatmul.bf16.vlgmr.msrb.gmra.mxu0 %v5470_v37  ;;  %v3960_v48 = vld [vmem:[#allocation5 + $0x4d8] sm:$0xf]  ;;  %v3449_v44 = vor.u32 %v4940_v45, %v3448_v38  ;;  %v2728_v28 = vadd.f32 %v2727_v14, %v2714_v9  ;;  %v5032_v9 = vld [vmem:[#allocation5 + $0x3dc] sm:$0xf] }
 0x17b   :  { %3094 = vmatpush.bf16.msra.mxu0 %v4089_v52  ;;  %3067 = vmatpush.bf16.msra.mxu1 %v3545_v2  ;;  %v5068_v49 = vld [vmem:[#allocation5 + $0x4f4] sm:$0xf0]  ;;  %v2740_v63 = vadd.f32 %v2739_v40, %v2726_v56 }
 0x17c   :  { %3046 = vmatmul.bf16.vlgmr.msra.gmra.mxu2 %v5472_v42  ;;  %v3704_v52 = vld [vmem:[#allocation5 + $0x2d8] sm:$0xf]  ;;  %v3961_v61 = vor.u32 %v5068_v49, %v3960_v48 }
 0x17d   :  { %3108 = vmatpush.bf16.msrb.mxu2 %v4345_v62  ;;  %3081 = vmatpush.bf16.msrb.mxu3 %v3801_v53  ;;  %v5004_v6 = vld [vmem:[#allocation5 + $0x2f4] sm:$0xf0]  ;;  %v2753_v3 = vpop.f32.mrf.mxu3  ;;  %v2769_v53 = vpop.f32.mrf.mxu0 }
 0x17e   :  { %v4216_v58 = vld [vmem:[#allocation5 + $0x6d8] sm:$0xf]  ;;  %v3705_v0 = vor.u32 %v5004_v6, %v3704_v52  ;;  %v2754_v10 = vadd.f32 %v2753_v3, %v2740_v63  ;;  %v2741_v24 = vpop.f32.mrf.mxu1  ;;  %v3578_v63 = vld [vmem:[#allocation5 + $0x1f8] sm:$0xf0] }
 0x17f   :  { %3095 = vmatpush.bf16.msra.mxu0 %v4057_v7  ;;  %3068 = vmatpush.bf16.msra.mxu1 %v3513_v18  ;;  %v5132_v59 = vld [vmem:[#allocation5 + $0x6f4] sm:$0xf0]  ;;  %v2742_v36 = vadd.f32 %v2741_v24, %v2728_v28  ;;  %v3514_v28 = vld [vmem:[#allocation5 + $0x178] sm:$0xf0] }
 0x180   :  { %v3416_v35 = vld [vmem:[#allocation5 + $0x98] sm:$0xf]  ;;  %v4217_v4 = vor.u32 %v5132_v59, %v4216_v58  ;;  %v2768_v20 = vadd.f32 %v2767_v15, %v2754_v10  ;;  %v3834_v10 = vld [vmem:[#allocation5 + $0x3f8] sm:$0xf0] }
 0x181   :  { %3109 = vmatpush.bf16.msrb.mxu2 %v4313_v13  ;;  %3082 = vmatpush.bf16.msrb.mxu3 %v3769_v26  ;;  %v4932_v62 = vld [vmem:[#allocation5 + $0xb4] sm:$0xf0] }
 0x182   :  { %v3928_v1 = vld [vmem:[#allocation5 + $0x498] sm:$0xf]  ;;  %v3417_v11 = vor.u32 %v4932_v62, %v3416_v35  ;;  %3264 = vst [vmem:[#allocation8 + $0x10] sm:$0xff] %v2768_v20  ;;  %v2781_v35 = vpop.f32.mrf.mxu2  ;;  %v4968_v62 = vld [vmem:[#allocation5 + $0x1dc] sm:$0xf] }
 0x183   :  { %3096 = vmatpush.bf16.msra.mxu0 %v4025_v22  ;;  %3069 = vmatpush.bf16.msra.mxu1 %v3481_v34  ;;  %v5060_v2 = vld [vmem:[#allocation5 + $0x4b4] sm:$0xf0] }
 0x184   :  { %v3672_v5 = vld [vmem:[#allocation5 + $0x298] sm:$0xf]  ;;  %4899 = vmatmul.msk.bf16.vlgmr.msra.gmra.mxu3 %vm2474_vm0, %v5466_v50  ;;  %v3929_v16 = vor.u32 %v5060_v2, %v3928_v1 }
 0x185   :  { %3110 = vmatpush.bf16.msrb.mxu2 %v4281_v29  ;;  %3083 = vmatpush.bf16.msrb.mxu3 %v3737_v47  ;;  %v4996_v7 = vld [vmem:[#allocation5 + $0x2b4] sm:$0xf0]  ;;  %v2755_v45 = vpop.f32.mrf.mxu3  ;;  %v5546_v58 = vpop.f32.mrf.mxu0 }
 0x186   :  { %v4184_v12 = vld [vmem:[#allocation5 + $0x698] sm:$0xf]  ;;  %v3673_v21 = vor.u32 %v4996_v7, %v3672_v5  ;;  %v2756_v52 = vadd.f32 %v2755_v45, %v2742_v36 }
 0x187   :  { %3097 = vmatpush.bf16.msra.mxu0 %v3993_v41  ;;  %3070 = vmatpush.bf16.msra.mxu1 %v3449_v44  ;;  %v5124_v13 = vld [vmem:[#allocation5 + $0x6b4] sm:$0xf0] }
 0x188   :  { %v3384_v17 = vld [vmem:[#allocation5 + $0x58] sm:$0xf]  ;;  %v4185_v26 = vor.u32 %v5124_v13, %v4184_v12 }
 0x189   :  { %3111 = vmatpush.bf16.msrb.mxu2 %v4249_v51  ;;  %v4924_v18 = vld [vmem:[#allocation5 + $0x74] sm:$0xf0]  ;;  %3084 = vmatpush.bf16.msrb.mxu3 %v3705_v0  ;;  %v2770_v0 = vadd.f32 %v2769_v53, %v2756_v52  ;;  %v3546_v53 = vld [vmem:[#allocation5 + $0x1b8] sm:$0xf0] }
 0x18a   :  { %v3640_v22 = vld [vmem:[#allocation5 + $0x258] sm:$0xf]  ;;  %v3385_v29 = vor.u32 %v4924_v18, %v3384_v17  ;;  %v3837_v17 = vor.u32 %v5032_v9, %v3834_v10  ;;  %v5000_v10 = vld [vmem:[#allocation5 + $0x2dc] sm:$0xf] }
 0x18b   :  { %3098 = vmatpush.bf16.msra.mxu0 %v3961_v61  ;;  %v3896_v23 = vld [vmem:[#allocation5 + $0x458] sm:$0xf]  ;;  %3071 = vmatpush.bf16.msra.mxu1 %v3417_v11  ;;  %3272 = vst [vmem:[#allocation8 + $0x50] sm:$0xff] %v2770_v0  ;;  %v3581_v11 = vor.u32 %v4968_v62, %v3578_v63  ;;  %v4936_v0 = vld [vmem:[#allocation5 + $0xdc] sm:$0xf] }
 0x18c   :  { %v5052_v46 = vld [vmem:[#allocation5 + $0x474] sm:$0xf0] }
 0x18d   :  { %3112 = vmatpush.bf16.msrb.mxu2 %v4217_v4  ;;  %v4988_v19 = vld [vmem:[#allocation5 + $0x274] sm:$0xf0]  ;;  %v3897_v32 = vor.u32 %v5052_v46, %v3896_v23  ;;  %3085 = vmatpush.bf16.msrb.mxu3 %v3673_v21  ;;  %v466_v21 = vperm.slane %v5529_v43, 3  ;;  %v5024_v23 = vld [vmem:[#allocation5 + $0x39c] sm:$0xf] }
 0x18e   :  { %v4152_v25 = vld [vmem:[#allocation5 + $0x658] sm:$0xf]  ;;  %v3641_v39 = vor.u32 %v4988_v19, %v3640_v22  ;;  %v3802_v46 = vld [vmem:[#allocation5 + $0x3b8] sm:$0xf0] }
 0x18f   :  { %v5116_v27 = vld [vmem:[#allocation5 + $0x674] sm:$0xf0]  ;;  %3099 = vmatpush.bf16.msra.mxu0 %v3929_v16  ;;  %3072 = vmatpush.bf16.msra.mxu1 %v3385_v29  ;;  %v4960_v16 = vld [vmem:[#allocation5 + $0x19c] sm:$0xf]  ;;  %v3805_v29 = vor.u32 %v5024_v23, %v3802_v46 }
 0x190   :  { %v3352_v30 = vld [vmem:[#allocation5 + $0x18] sm:$0xf]  ;;  %v4153_v47 = vor.u32 %v5116_v27, %v4152_v25  ;;  %v3549_v24 = vor.u32 %v4960_v16, %v3546_v53  ;;  %v4952_v27 = vld [vmem:[#allocation5 + $0x15c] sm:$0xf] }
 0x191   :  { %v4916_v31 = vld [vmem:[#allocation5 + $0x34] sm:$0xf0]  ;;  %3113 = vmatpush.bf16.msrb.mxu2 %v4185_v26  ;;  %3086 = vmatpush.bf16.msrb.mxu3 %v3641_v39  ;;  %v5016_v39 = vld [vmem:[#allocation5 + $0x35c] sm:$0xf] }
 0x192   :  { %v4600_v15 = vld [vmem:[#allocation5 + $0x9d8] sm:$0xf]  ;;  %v3353_v6 = vor.u32 %v4916_v31, %v3352_v30  ;;  %v3418_v23 = vld [vmem:[#allocation5 + $0xb8] sm:$0xf0] }
 0x193   :  { %v5228_v33 = vld [vmem:[#allocation5 + $0x9f4] sm:$0xf0]  ;;  %3100 = vmatpush.bf16.msra.mxu0 %v3897_v32  ;;  %v2797_v32 = vpop.f32.mrf.mxu0 }
 0x194   :  { %v3608_v34 = vld [vmem:[#allocation5 + $0x218] sm:$0xf]  ;;  %v4601_v59 = vor.u32 %v5228_v33, %v4600_v15  ;;  %3073 = vmatpush.bf16.msra.mxu1 %v3353_v6  ;;  %v2782_v15 = vadd.f32 %v2781_v35, %v466_v21  ;;  %v2809_v33 = vpop.f32.mrf.mxu1 }
 0x195   :  { %v4980_v40 = vld [vmem:[#allocation5 + $0x234] sm:$0xf0]  ;;  %3114 = vmatpush.bf16.msrb.mxu2 %v4153_v47 }
 0x196   :  { %v3864_v41 = vld [vmem:[#allocation5 + $0x418] sm:$0xf]  ;;  %v3609_v1 = vor.u32 %v4980_v40, %v3608_v34  ;;  %v2783_v34 = vpop.f32.mrf.mxu2  ;;  %v3770_v40 = vld [vmem:[#allocation5 + $0x378] sm:$0xf0] }
 0x197   :  { %v5044_v38 = vld [vmem:[#allocation5 + $0x434] sm:$0xf0]  ;;  %3074 = vmatmul.bf16.vlgmr.msra.gmra.mxu1 %v5456_v55 }
 0x198   :  { %v4120_v48 = vld [vmem:[#allocation5 + $0x618] sm:$0xf]  ;;  %v3865_v61 = vor.u32 %v5044_v38, %v3864_v41  ;;  %3122 = vmatpush.bf16.msrb.mxu1 %v4601_v59  ;;  %3087 = vmatpush.bf16.msrb.mxu3 %v3609_v1  ;;  %v3517_v41 = vor.u32 %v4952_v27, %v3514_v28  ;;  %v3738_v59 = vld [vmem:[#allocation5 + $0x338] sm:$0xf0] }
 0x199   :  { %v4888_v49 = vld [vmem:[#allocation5 + $0xc18] sm:$0xf]  ;;  %v3450_v1 = vld [vmem:[#allocation5 + $0xf8] sm:$0xf0] }
 0x19a   :  { %v5300_v51 = vld [vmem:[#allocation5 + $0xc34] sm:$0xf0]  ;;  %3101 = vmatpush.bf16.msra.mxu0 %v3865_v61  ;;  %v4992_v27 = vld [vmem:[#allocation5 + $0x29c] sm:$0xf] }
 0x19b   :  { %v5108_v56 = vld [vmem:[#allocation5 + $0x634] sm:$0xf0]  ;;  %v4889_v4 = vor.u32 %v5300_v51, %v4888_v49  ;;  %3088 = vmatmul.bf16.vlgmr.msrb.gmra.mxu3 %v5462_v8  ;;  %v3482_v49 = vld [vmem:[#allocation5 + $0x138] sm:$0xf0]  ;;  %v3773_v51 = vor.u32 %v5016_v39, %v3770_v40 }
 0x19c   :  { %v4856_v57 = vld [vmem:[#allocation5 + $0xbd8] sm:$0xf]  ;;  %v4121_v5 = vor.u32 %v5108_v56, %v4120_v48  ;;  %v4944_v48 = vld [vmem:[#allocation5 + $0x11c] sm:$0xf]  ;;  %v2796_v56 = vadd.f32 %v5546_v58, %v2782_v15  ;;  %v2811_v58 = vpop.f32.mrf.mxu1 }
 0x19d   :  { %v5292_v44 = vld [vmem:[#allocation5 + $0xbf4] sm:$0xf0]  ;;  %3102 = vmatmul.bf16.vlgmr.msra.gmra.mxu0 %v5454_v54  ;;  %v3485_v61 = vor.u32 %v4944_v48, %v3482_v49  ;;  %v3674_v28 = vld [vmem:[#allocation5 + $0x2b8] sm:$0xf0] }
 0x19e   :  { %v4568_v2 = vld [vmem:[#allocation5 + $0x998] sm:$0xf]  ;;  %v4857_v7 = vor.u32 %v5292_v44, %v4856_v57  ;;  %3157 = vmatpush.bf16.msrb.mxu0 %v4889_v4  ;;  %3115 = vmatpush.bf16.msrb.mxu2 %v4121_v5  ;;  %v5008_v44 = vld [vmem:[#allocation5 + $0x31c] sm:$0xf]  ;;  %v2810_v5 = vadd.f32 %v2809_v33, %v2796_v56  ;;  %v3677_v39 = vor.u32 %v4992_v27, %v3674_v28 }
 0x19f   :  { %v5220_v3 = vld [vmem:[#allocation5 + $0x9b4] sm:$0xf0]  ;;  %v4090_v48 = vld [vmem:[#allocation5 + $0x5f8] sm:$0xf0] }
 0x1a0   :  { %v4824_v12 = vld [vmem:[#allocation5 + $0xb98] sm:$0xf]  ;;  %v4569_v14 = vor.u32 %v5220_v3, %v4568_v2  ;;  %3136 = vmatpush.bf16.msra.mxu3 %v4857_v7  ;;  %v3741_v2 = vor.u32 %v5008_v44, %v3738_v59  ;;  %v2784_v7 = vadd.f32 %v2783_v34, %v466_v21  ;;  %v4920_v34 = vld [vmem:[#allocation5 + $0x5c] sm:$0xf] }
 0x1a1   :  { %v5284_v13 = vld [vmem:[#allocation5 + $0xbb4] sm:$0xf0]  ;;  %3116 = vmatmul.bf16.vlgmr.msrb.gmra.mxu2 %v5458_v60  ;;  %v4984_v49 = vld [vmem:[#allocation5 + $0x25c] sm:$0xf] }
 0x1a2   :  { %v4536_v18 = vld [vmem:[#allocation5 + $0x958] sm:$0xf]  ;;  %v4825_v22 = vor.u32 %v5284_v13, %v4824_v12  ;;  %3164 = vmatpush.bf16.msra.mxu2 %v3581_v11  ;;  %3123 = vmatpush.bf16.msrb.mxu1 %v4569_v14  ;;  %v3706_v11 = vld [vmem:[#allocation5 + $0x2f8] sm:$0xf0]  ;;  %v2823_v12 = vpop.f32.mrf.mxu3  ;;  %v3453_v13 = vor.u32 %v4936_v0, %v3450_v1  ;;  %v2851_v14 = vpop.f32.mrf.mxu0 }
 0x1a3   :  { %v5212_v20 = vld [vmem:[#allocation5 + $0x974] sm:$0xf0]  ;;  %3178 = vmatpush.bf16.msra.mxu0 %v3837_v17  ;;  %v2824_v17 = vadd.f32 %v2823_v12, %v2810_v5  ;;  %v3709_v46 = vor.u32 %v5000_v10, %v3706_v11  ;;  %v4912_v59 = vld [vmem:[#allocation5 + $0x1c] sm:$0xf] }
 0x1a4   :  { %v4792_v26 = vld [vmem:[#allocation5 + $0xb58] sm:$0xf]  ;;  %v4537_v25 = vor.u32 %v5212_v20, %v4536_v18  ;;  %3137 = vmatpush.bf16.msra.mxu3 %v4825_v22  ;;  %v2837_v18 = vpop.f32.mrf.mxu2  ;;  %v4928_v22 = vld [vmem:[#allocation5 + $0x9c] sm:$0xf] }
 0x1a5   :  { %v5276_v19 = vld [vmem:[#allocation5 + $0xb74] sm:$0xf0]  ;;  %v5160_v0 = vld [vmem:[#allocation5 + $0x7dc] sm:$0xf] }
 0x1a6   :  { %v4504_v30 = vld [vmem:[#allocation5 + $0x918] sm:$0xf]  ;;  %v4793_v36 = vor.u32 %v5276_v19, %v4792_v26  ;;  %3165 = vmatpush.bf16.msra.mxu2 %v3549_v24  ;;  %3124 = vmatpush.bf16.msrb.mxu1 %v4537_v25  ;;  %v2798_v26 = vadd.f32 %v2797_v32, %v2784_v7  ;;  %v2838_v19 = vadd.f32 %v2837_v18, %v2824_v17  ;;  %v4346_v1 = vld [vmem:[#allocation5 + $0x7f8] sm:$0xf0] }
 0x1a7   :  { %v5204_v31 = vld [vmem:[#allocation5 + $0x934] sm:$0xf0]  ;;  %3179 = vmatpush.bf16.msra.mxu0 %v3805_v29  ;;  %v3421_v29 = vor.u32 %v4928_v22, %v3418_v23  ;;  %v5224_v5 = vld [vmem:[#allocation5 + $0x9dc] sm:$0xf] }
 0x1a8   :  { %v4760_v38 = vld [vmem:[#allocation5 + $0xb18] sm:$0xf]  ;;  %v4505_v47 = vor.u32 %v5204_v31, %v4504_v30  ;;  %3138 = vmatpush.bf16.msra.mxu3 %v4793_v36  ;;  %v2852_v15 = vadd.f32 %v2851_v14, %v2838_v19  ;;  %v3386_v36 = vld [vmem:[#allocation5 + $0x78] sm:$0xf0] }
 0x1a9   :  { %v5268_v45 = vld [vmem:[#allocation5 + $0xb34] sm:$0xf0]  ;;  %v3389_v56 = vor.u32 %v4920_v34, %v3386_v36  ;;  %v4602_v7 = vld [vmem:[#allocation5 + $0x9f8] sm:$0xf0] }
 0x1aa   :  { %v4472_v52 = vld [vmem:[#allocation5 + $0x8d8] sm:$0xf]  ;;  %v4761_v57 = vor.u32 %v5268_v45, %v4760_v38  ;;  %3166 = vmatpush.bf16.msra.mxu2 %v3517_v41  ;;  %3125 = vmatpush.bf16.msrb.mxu1 %v4505_v47  ;;  %v5096_v41 = vld [vmem:[#allocation5 + $0x5dc] sm:$0xf]  ;;  %v2812_v38 = vadd.f32 %v2811_v58, %v2798_v26  ;;  %v2865_v45 = vpop.f32.mrf.mxu1  ;;  %v4605_v17 = vor.u32 %v5224_v5, %v4602_v7 }
 0x1ab   :  { %v5196_v6 = vld [vmem:[#allocation5 + $0x8f4] sm:$0xf0]  ;;  %3180 = vmatpush.bf16.msra.mxu0 %v3773_v51  ;;  %v3642_v51 = vld [vmem:[#allocation5 + $0x278] sm:$0xf0] }
 0x1ac   :  { %v4728_v35 = vld [vmem:[#allocation5 + $0xad8] sm:$0xf]  ;;  %v4473_v63 = vor.u32 %v5196_v6, %v4472_v52  ;;  %3139 = vmatpush.bf16.msra.mxu3 %v4761_v57  ;;  %v2866_v52 = vadd.f32 %v2865_v45, %v2852_v15  ;;  %v2825_v6 = vpop.f32.mrf.mxu3  ;;  %v5088_v10 = vld [vmem:[#allocation5 + $0x59c] sm:$0xf] }
 0x1ad   :  { %v5260_v62 = vld [vmem:[#allocation5 + $0xaf4] sm:$0xf0]  ;;  %4900 = vmatmul.msk.bf16.vlgmr.msrb.gmra.mxu0 %vm2474_vm0, %v5466_v50  ;;  %v4058_v11 = vld [vmem:[#allocation5 + $0x5b8] sm:$0xf0] }
 0x1ae   :  { %v4440_v3 = vld [vmem:[#allocation5 + $0x898] sm:$0xf]  ;;  %v4729_v9 = vor.u32 %v5260_v62, %v4728_v35  ;;  %3167 = vmatpush.bf16.msra.mxu2 %v3485_v61  ;;  %3126 = vmatpush.bf16.msrb.mxu1 %v4473_v63  ;;  %v2826_v61 = vadd.f32 %v2825_v6, %v2812_v38  ;;  %v2839_v35 = vpop.f32.mrf.mxu2  ;;  %v3354_v63 = vld [vmem:[#allocation5 + $0x38] sm:$0xf0]  ;;  %3265 = vst [vmem:[#allocation8 + $0x18] sm:$0xff] %v2866_v52 }
 0x1af   :  { %v5188_v4 = vld [vmem:[#allocation5 + $0x8b4] sm:$0xf0]  ;;  %3181 = vmatpush.bf16.msra.mxu0 %v3741_v2  ;;  %v2853_v2 = vpop.f32.mrf.mxu0  ;;  %v3357_v12 = vor.u32 %v4912_v59, %v3354_v63  ;;  %v3610_v14 = vld [vmem:[#allocation5 + $0x238] sm:$0xf0]  ;;  %v4061_v23 = vor.u32 %v5088_v10, %v4058_v11 }
 0x1b0   :  { %v4696_v16 = vld [vmem:[#allocation5 + $0xa98] sm:$0xf]  ;;  %v4441_v20 = vor.u32 %v5188_v4, %v4440_v3  ;;  %3140 = vmatpush.bf16.msra.mxu3 %v4729_v9  ;;  %v4093_v3 = vor.u32 %v5096_v41, %v4090_v48  ;;  %v3645_v4 = vor.u32 %v4984_v49, %v3642_v51  ;;  %v2840_v58 = vadd.f32 %v2839_v35, %v2826_v61  ;;  %v5288_v18 = vld [vmem:[#allocation5 + $0xbdc] sm:$0xf] }
 0x1b1   :  { %v5252_v53 = vld [vmem:[#allocation5 + $0xab4] sm:$0xf0]  ;;  %v5152_v22 = vld [vmem:[#allocation5 + $0x79c] sm:$0xf] }
 0x1b2   :  { %v4408_v21 = vld [vmem:[#allocation5 + $0x858] sm:$0xf]  ;;  %v4697_v25 = vor.u32 %v5252_v53, %v4696_v16  ;;  %3168 = vmatpush.bf16.msra.mxu2 %v3453_v13  ;;  %3127 = vmatpush.bf16.msrb.mxu1 %v4441_v20  ;;  %v4976_v13 = vld [vmem:[#allocation5 + $0x21c] sm:$0xf]  ;;  %v2854_v16 = vadd.f32 %v2853_v2, %v2840_v58  ;;  %v4349_v53 = vor.u32 %v5160_v0, %v4346_v1  ;;  %v2867_v26 = vpop.f32.mrf.mxu1 }
 0x1b3   :  { %v5180_v24 = vld [vmem:[#allocation5 + $0x874] sm:$0xf0]  ;;  %3182 = vmatpush.bf16.msra.mxu0 %v3709_v46  ;;  %v4858_v20 = vld [vmem:[#allocation5 + $0xbf8] sm:$0xf0]  ;;  %v3613_v19 = vor.u32 %v4976_v13, %v3610_v14 }
 0x1b4   :  { %v4664_v30 = vld [vmem:[#allocation5 + $0xa58] sm:$0xf]  ;;  %v4409_v33 = vor.u32 %v5180_v24, %v4408_v21  ;;  %3141 = vmatpush.bf16.msra.mxu3 %v4697_v25  ;;  %v4314_v46 = vld [vmem:[#allocation5 + $0x7b8] sm:$0xf0]  ;;  %v2868_v28 = vadd.f32 %v2867_v26, %v2854_v16 }
 0x1b5   :  { %v5244_v31 = vld [vmem:[#allocation5 + $0xa74] sm:$0xf0]  ;;  %v5216_v21 = vld [vmem:[#allocation5 + $0x99c] sm:$0xf] }
 0x1b6   :  { %v4376_v32 = vld [vmem:[#allocation5 + $0x818] sm:$0xf]  ;;  %v4665_v47 = vor.u32 %v5244_v31, %v4664_v30  ;;  %3169 = vmatpush.bf16.msra.mxu2 %v3421_v29  ;;  %3128 = vmatpush.bf16.msrb.mxu1 %v4409_v33  ;;  %v4570_v24 = vld [vmem:[#allocation5 + $0x9b8] sm:$0xf0]  ;;  %v4861_v29 = vor.u32 %v5288_v18, %v4858_v20  ;;  %v4317_v31 = vor.u32 %v5152_v22, %v4314_v46 }
 0x1b7   :  { %v5172_v40 = vld [vmem:[#allocation5 + $0x834] sm:$0xf0]  ;;  %3183 = vmatpush.bf16.msra.mxu0 %v3677_v39  ;;  %v5080_v25 = vld [vmem:[#allocation5 + $0x55c] sm:$0xf]  ;;  %v4573_v15 = vor.u32 %v5216_v21, %v4570_v24  ;;  %3273 = vst [vmem:[#allocation8 + $0x58] sm:$0xff] %v2868_v28 }
 0x1b8   :  { %v4632_v57 = vld [vmem:[#allocation5 + $0xa18] sm:$0xf]  ;;  %v4377_v62 = vor.u32 %v5172_v40, %v4376_v32  ;;  %3142 = vmatpush.bf16.msra.mxu3 %v4665_v47  ;;  %v4026_v27 = vld [vmem:[#allocation5 + $0x578] sm:$0xf0] }
 0x1b9   :  { %v5236_v44 = vld [vmem:[#allocation5 + $0xa34] sm:$0xf0]  ;;  %v5280_v30 = vld [vmem:[#allocation5 + $0xb9c] sm:$0xf]  ;;  %v4029_v39 = vor.u32 %v5080_v25, %v4026_v27 }
 0x1ba   :  { %v4633_v9 = vor.u32 %v5236_v44, %v4632_v57  ;;  %3170 = vmatpush.bf16.msra.mxu2 %v3389_v56  ;;  %3129 = vmatpush.bf16.msrb.mxu1 %v4377_v62  ;;  %v4826_v33 = vld [vmem:[#allocation5 + $0xbb8] sm:$0xf0] }
 0x1bb   :  { %3184 = vmatpush.bf16.msra.mxu0 %v3645_v4  ;;  %v5144_v34 = vld [vmem:[#allocation5 + $0x75c] sm:$0xf]  ;;  %v4829_v45 = vor.u32 %v5280_v30, %v4826_v33 }
 0x1bc   :  { %3143 = vmatpush.bf16.msra.mxu3 %v4633_v9  ;;  %v4282_v36 = vld [vmem:[#allocation5 + $0x778] sm:$0xf0] }
 0x1bd   :  { %3130 = vmatmul.bf16.vlgmr.msrb.gmra.mxu1 %v5470_v37  ;;  %v5208_v32 = vld [vmem:[#allocation5 + $0x95c] sm:$0xf]  ;;  %v4285_v47 = vor.u32 %v5144_v34, %v4282_v36 }
 0x1be   :  { %3192 = vmatpush.bf16.msra.mxu1 %v4093_v3  ;;  %3171 = vmatpush.bf16.msra.mxu2 %v3357_v12  ;;  %v4538_v40 = vld [vmem:[#allocation5 + $0x978] sm:$0xf0] }
 0x1bf   :  { %3144 = vmatmul.bf16.vlgmr.msra.gmra.mxu3 %v5472_v42  ;;  %3185 = vmatpush.bf16.msra.mxu0 %v3613_v19  ;;  %v5072_v41 = vld [vmem:[#allocation5 + $0x51c] sm:$0xf]  ;;  %v4541_v48 = vor.u32 %v5208_v32, %v4538_v40 }
 0x1c0   :  { %3206 = vmatpush.bf16.msrb.mxu3 %v4349_v53  ;;  %v3994_v38 = vld [vmem:[#allocation5 + $0x538] sm:$0xf0] }
 0x1c1   :  { %3172 = vmatmul.bf16.vlgmr.msra.gmra.mxu2 %v5456_v55  ;;  %v5272_v49 = vld [vmem:[#allocation5 + $0xb5c] sm:$0xf]  ;;  %v3997_v6 = vor.u32 %v5072_v41, %v3994_v38 }
 0x1c2   :  { %3220 = vmatpush.bf16.msrb.mxu2 %v4605_v17  ;;  %3193 = vmatpush.bf16.msra.mxu1 %v4061_v23  ;;  %v4794_v51 = vld [vmem:[#allocation5 + $0xb78] sm:$0xf0] }
 0x1c3   :  { %3234 = vmatpush.bf16.msrb.mxu0 %v4861_v29  ;;  %v5136_v52 = vld [vmem:[#allocation5 + $0x71c] sm:$0xf]  ;;  %v4797_v55 = vor.u32 %v5272_v49, %v4794_v51 }
 0x1c4   :  { %3207 = vmatpush.bf16.msrb.mxu3 %v4317_v31  ;;  %v4250_v56 = vld [vmem:[#allocation5 + $0x738] sm:$0xf0]  ;;  %3186 = vmatmul.bf16.vlgmr.msra.gmra.mxu0 %v5462_v8 }
 0x1c5   :  { %v5200_v57 = vld [vmem:[#allocation5 + $0x91c] sm:$0xf]  ;;  %v4253_v35 = vor.u32 %v5136_v52, %v4250_v56  ;;  %v2879_v52 = vpop.f32.mrf.mxu3 }
 0x1c6   :  { %3221 = vmatpush.bf16.msrb.mxu2 %v4573_v15  ;;  %3194 = vmatpush.bf16.msra.mxu1 %v4029_v39  ;;  %v4506_v44 = vld [vmem:[#allocation5 + $0x938] sm:$0xf0] }
 0x1c7   :  { %v5064_v59 = vld [vmem:[#allocation5 + $0x4dc] sm:$0xf]  ;;  %3235 = vmatpush.bf16.msrb.mxu0 %v4829_v45  ;;  %v4509_v62 = vor.u32 %v5200_v57, %v4506_v44  ;;  %v2893_v45 = vpop.f32.mrf.mxu1  ;;  %v467_v44 = vperm.slane %v5529_v43, 4 }
 0x1c8   :  { %v3962_v61 = vld [vmem:[#allocation5 + $0x4f8] sm:$0xf0]  ;;  %3208 = vmatpush.bf16.msrb.mxu3 %v4285_v47 }
 0x1c9   :  { %v5264_v63 = vld [vmem:[#allocation5 + $0xb1c] sm:$0xf]  ;;  %v3965_v2 = vor.u32 %v5064_v59, %v3962_v61  ;;  %v2907_v59 = vpop.f32.mrf.mxu2 }
 0x1ca   :  { %3222 = vmatpush.bf16.msrb.mxu2 %v4541_v48  ;;  %v4762_v0 = vld [vmem:[#allocation5 + $0xb38] sm:$0xf0]  ;;  %3195 = vmatpush.bf16.msra.mxu1 %v3997_v6 }
 0x1cb   :  { %v5128_v1 = vld [vmem:[#allocation5 + $0x6dc] sm:$0xf]  ;;  %3236 = vmatpush.bf16.msrb.mxu0 %v4797_v55  ;;  %v4765_v8 = vor.u32 %v5264_v63, %v4762_v0 }
 0x1cc   :  { %v4218_v3 = vld [vmem:[#allocation5 + $0x6f8] sm:$0xf0]  ;;  %3209 = vmatpush.bf16.msrb.mxu3 %v4253_v35  ;;  %v2880_v35 = vadd.f32 %v2879_v52, %v467_v44  ;;  %v5312_v52 = vld [vmem:[#allocation7] sm:$0xff] }
 0x1cd   :  { %v5192_v4 = vld [vmem:[#allocation5 + $0x8dc] sm:$0xf]  ;;  %v4221_v9 = vor.u32 %v5128_v1, %v4218_v3  ;;  %v2881_v0 = vpop.f32.mrf.mxu3 }
 0x1ce   :  { %v4474_v5 = vld [vmem:[#allocation5 + $0x8f8] sm:$0xf0]  ;;  %3223 = vmatpush.bf16.msrb.mxu2 %v4509_v62  ;;  %3196 = vmatpush.bf16.msra.mxu1 %v3965_v2  ;;  %v2894_v63 = vadd.f32 %v2893_v45, %v2880_v35  ;;  %v2921_v2 = vpop.f32.mrf.mxu0 }
 0x1cf   :  { %v5056_v7 = vld [vmem:[#allocation5 + $0x49c] sm:$0xf]  ;;  %v4477_v10 = vor.u32 %v5192_v4, %v4474_v5  ;;  %3237 = vmatpush.bf16.msrb.mxu0 %v4765_v8  ;;  %v2895_v62 = vpop.f32.mrf.mxu1  ;;  %v2882_v4 = vadd.f32 %v2881_v0, %v467_v44 }
 0x1d0   :  { %v3930_v58 = vld [vmem:[#allocation5 + $0x4b8] sm:$0xf0]  ;;  %3210 = vmatpush.bf16.msrb.mxu3 %v4221_v9  ;;  %v2908_v3 = vadd.f32 %v2907_v59, %v2894_v63 }
 0x1d1   :  { %v5256_v11 = vld [vmem:[#allocation5 + $0xadc] sm:$0xf]  ;;  %v3933_v14 = vor.u32 %v5056_v7, %v3930_v58  ;;  %v2909_v1 = vpop.f32.mrf.mxu2 }
 0x1d2   :  { %v4730_v12 = vld [vmem:[#allocation5 + $0xaf8] sm:$0xf0]  ;;  %3224 = vmatpush.bf16.msrb.mxu2 %v4477_v10  ;;  %v2922_v7 = vadd.f32 %v2921_v2, %v2908_v3 }
 0x1d3   :  { %v5120_v13 = vld [vmem:[#allocation5 + $0x69c] sm:$0xf]  ;;  %v4733_v22 = vor.u32 %v5256_v11, %v4730_v12  ;;  %3197 = vmatpush.bf16.msra.mxu1 %v3933_v14 }
 0x1d4   :  { %v4186_v16 = vld [vmem:[#allocation5 + $0x6b8] sm:$0xf0] }
 0x1d5   :  { %v5184_v53 = vld [vmem:[#allocation5 + $0x89c] sm:$0xf]  ;;  %v4189_v23 = vor.u32 %v5120_v13, %v4186_v16  ;;  %3238 = vmatpush.bf16.msrb.mxu0 %v4733_v22  ;;  %v2935_v58 = vpop.f32.mrf.mxu3  ;;  %v468_v22 = vperm.slane %v5529_v43, 5 }
 0x1d6   :  { %v4442_v17 = vld [vmem:[#allocation5 + $0x8b8] sm:$0xf0]  ;;  %v2936_v9 = vadd.f32 %v2935_v58, %v2922_v7 }
 0x1d7   :  { %v5048_v18 = vld [vmem:[#allocation5 + $0x45c] sm:$0xf]  ;;  %v4445_v46 = vor.u32 %v5184_v53, %v4442_v17  ;;  %3211 = vmatpush.bf16.msrb.mxu3 %v4189_v23  ;;  %v2949_v5 = vpop.f32.mrf.mxu1 }
 0x1d8   :  { %v3898_v20 = vld [vmem:[#allocation5 + $0x478] sm:$0xf0]  ;;  %v2950_v10 = vadd.f32 %v2949_v5, %v2936_v9 }
 0x1d9   :  { %v5248_v21 = vld [vmem:[#allocation5 + $0xa9c] sm:$0xf]  ;;  %v3901_v19 = vor.u32 %v5048_v18, %v3898_v20  ;;  %3225 = vmatpush.bf16.msrb.mxu2 %v4445_v46  ;;  %v2963_v8 = vpop.f32.mrf.mxu2 }
 0x1da   :  { %v4698_v24 = vld [vmem:[#allocation5 + $0xab8] sm:$0xf0]  ;;  %v2964_v11 = vadd.f32 %v2963_v8, %v2950_v10 }
 0x1db   :  { %v5112_v26 = vld [vmem:[#allocation5 + $0x65c] sm:$0xf]  ;;  %v4701_v31 = vor.u32 %v5248_v21, %v4698_v24  ;;  %3198 = vmatpush.bf16.msra.mxu1 %v3901_v19 }
 0x1dc   :  { %v4154_v25 = vld [vmem:[#allocation5 + $0x678] sm:$0xf0]  ;;  %3266 = vst [vmem:[#allocation8 + $0x20] sm:$0xff] %v2964_v11 }
 0x1dd   :  { %v5176_v27 = vld [vmem:[#allocation5 + $0x85c] sm:$0xf]  ;;  %v4157_v34 = vor.u32 %v5112_v26, %v4154_v25  ;;  %3239 = vmatpush.bf16.msrb.mxu0 %v4701_v31 }
 0x1de   :  { %v4410_v28 = vld [vmem:[#allocation5 + $0x878] sm:$0xf0] }
 0x1df   :  { %v5040_v29 = vld [vmem:[#allocation5 + $0x41c] sm:$0xf]  ;;  %v4413_v36 = vor.u32 %v5176_v27, %v4410_v28  ;;  %3212 = vmatpush.bf16.msrb.mxu3 %v4157_v34  ;;  %v2951_v13 = vpop.f32.mrf.mxu1 }
 0x1e0   :  { %v3866_v30 = vld [vmem:[#allocation5 + $0x438] sm:$0xf0] }
 0x1e1   :  { %v5296_v15 = vld [vmem:[#allocation5 + $0xc1c] sm:$0xf]  ;;  %v3869_v40 = vor.u32 %v5040_v29, %v3866_v30  ;;  %3226 = vmatpush.bf16.msrb.mxu2 %v4413_v36  ;;  %v2965_v16 = vpop.f32.mrf.mxu2 }
 0x1e2   :  { %v4890_v33 = vld [vmem:[#allocation5 + $0xc38] sm:$0xf0] }
 0x1e3   :  { %v5240_v39 = vld [vmem:[#allocation5 + $0xa5c] sm:$0xf]  ;;  %v4893_v49 = vor.u32 %v5296_v15, %v4890_v33  ;;  %3199 = vmatpush.bf16.msra.mxu1 %v3869_v40 }
 0x1e4   :  { %v4666_v32 = vld [vmem:[#allocation5 + $0xa78] sm:$0xf0] }
 0x1e5   :  { %v5104_v41 = vld [vmem:[#allocation5 + $0x61c] sm:$0xf]  ;;  %v4669_v51 = vor.u32 %v5240_v39, %v4666_v32 }
 0x1e6   :  { %v4122_v38 = vld [vmem:[#allocation5 + $0x638] sm:$0xf0]  ;;  %3200 = vmatmul.bf16.vlgmr.msra.gmra.mxu1 %v5454_v54  ;;  %v2896_v54 = vadd.f32 %v2895_v62, %v2882_v4 }
 0x1e7   :  { %v5168_v47 = vld [vmem:[#allocation5 + $0x81c] sm:$0xf]  ;;  %v4125_v6 = vor.u32 %v5104_v41, %v4122_v38  ;;  %3255 = vmatpush.bf16.msrb.mxu1 %v4893_v49  ;;  %3240 = vmatpush.bf16.msrb.mxu0 %v4669_v51 }
 0x1e8   :  { %v4378_v48 = vld [vmem:[#allocation5 + $0x838] sm:$0xf0] }
 0x1e9   :  { %v5232_v56 = vld [vmem:[#allocation5 + $0xa1c] sm:$0xf]  ;;  %v4381_v61 = vor.u32 %v5168_v47, %v4378_v48  ;;  %3213 = vmatpush.bf16.msrb.mxu3 %v4125_v6  ;;  %v2991_v20 = vpop.f32.mrf.mxu2  ;;  %v469_v6 = vperm.slane %v5312_v52, 6 }
 0x1ea   :  { %v4634_v57 = vld [vmem:[#allocation5 + $0xa38] sm:$0xf0] }
 0x1eb   :  { %v4637_v55 = vor.u32 %v5232_v56, %v4634_v57  ;;  %3227 = vmatpush.bf16.msrb.mxu2 %v4381_v61 }
 0x1ec   :  { %3214 = vmatmul.bf16.vlgmr.msrb.gmra.mxu3 %v5458_v60  ;;  %v2910_v60 = vadd.f32 %v2909_v1, %v2896_v54 }
 0x1ed   :  { %3241 = vmatpush.bf16.msrb.mxu0 %v4637_v55 }
 0x1ee   :  { %3228 = vmatmul.bf16.vlgmr.msrb.gmra.mxu2 %v5470_v37  ;;  %v2923_v37 = vpop.f32.mrf.mxu0 }
 0x1ef   :  { %v2924_v12 = vadd.f32 %v2923_v37, %v2910_v60 }
 0x1f0   :  { %3242 = vmatmul.bf16.vlgmr.msrb.gmra.mxu0 %v5472_v42  ;;  %v2937_v42 = vpop.f32.mrf.mxu3 }
 0x1f1   :  { %v2938_v14 = vadd.f32 %v2937_v42, %v2924_v12  ;;  %v2993_v21 = vpop.f32.mrf.mxu2 }
 0x1f3   :  { %v2952_v53 = vadd.f32 %v2951_v13, %v2938_v14  ;;  %v3019_v26 = vpop.f32.mrf.mxu1 }
 0x1f5   :  { %v2966_v17 = vadd.f32 %v2965_v16, %v2952_v53  ;;  %v470_v16 = vperm.slane %v5312_v52, 7 }
 0x1f6   :  { %4901 = vmatmul.msk.bf16.vlgmr.msrb.gmra.mxu1 %vm2474_vm0, %v5466_v50  ;;  %v2977_v18 = vpop.f32.mrf.mxu0 }
 0x1f7   :  { %3274 = vst [vmem:[#allocation8 + $0x60] sm:$0xff] %v2966_v17  ;;  %v2978_v23 = vadd.f32 %v2977_v18, %v468_v22 }
 0x1f8   :  { %v3005_v24 = vpop.f32.mrf.mxu3 }
 0x1f9   :  { %v2992_v50 = vadd.f32 %v2991_v20, %v2978_v23 }
 0x1fb   :  { %v3006_v19 = vadd.f32 %v3005_v24, %v2992_v50  ;;  %v3021_v34 = vpop.f32.mrf.mxu1 }
 0x1fd   :  { %v3020_v28 = vadd.f32 %v3019_v26, %v3006_v19 }
 0x1fe   :  { %v2979_v46 = vpop.f32.mrf.mxu0 }
 0x1ff   :  { %v2980_v25 = vadd.f32 %v2979_v46, %v468_v22  ;;  %v3047_v31 = vpop.f32.mrf.mxu2 }
 0x200   :  { %v3007_v29 = vpop.f32.mrf.mxu3 }
 0x201   :  { %v2994_v30 = vadd.f32 %v2993_v21, %v2980_v25 }
 0x203   :  { %v3008_v33 = vadd.f32 %v3007_v29, %v2994_v30 }
 0x205   :  { %v3022_v39 = vadd.f32 %v3021_v34, %v3008_v33 }
 0x206   :  { %v3033_v27 = vpop.f32.mrf.mxu0 }
 0x207   :  { %v3034_v15 = vadd.f32 %v3033_v27, %v3020_v28  ;;  %v3049_v38 = vpop.f32.mrf.mxu2 }
 0x208   :  { %v3061_v43 = vpop.f32.mrf.mxu3 }
 0x209   :  { %v3048_v36 = vadd.f32 %v3047_v31, %v3034_v15 }
 0x20b   :  { %v3062_v40 = vadd.f32 %v3061_v43, %v3048_v36 }
 0x20d   :  { %3267 = vst [vmem:[#allocation8 + $0x28] sm:$0xff] %v3062_v40 }
 0x20e   :  { %v3035_v32 = vpop.f32.mrf.mxu0 }
 0x20f   :  { %v3036_v41 = vadd.f32 %v3035_v32, %v3022_v39 }
 0x210   :  { %v3063_v47 = vpop.f32.mrf.mxu3 }
 0x211   :  { %v3050_v45 = vadd.f32 %v3049_v38, %v3036_v41 }
 0x213   :  { %v3064_v48 = vadd.f32 %v3063_v47, %v3050_v45 }
 0x214   :  { %v3075_v51 = vpop.f32.mrf.mxu1 }
 0x215   :  { %3275 = vst [vmem:[#allocation8 + $0x68] sm:$0xff] %v3064_v48  ;;  %v3076_v44 = vadd.f32 %v3075_v51, %v469_v6 }
 0x21a   :  { %v3103_v49 = vpop.f32.mrf.mxu0 }
 0x21c   :  { %v3077_v59 = vpop.f32.mrf.mxu1 }
 0x21d   :  { %v3078_v0 = vadd.f32 %v3077_v59, %v469_v6 }
 0x21e   :  { %v3089_v56 = vpop.f32.mrf.mxu3 }
 0x21f   :  { %v3090_v61 = vadd.f32 %v3089_v56, %v3076_v44 }
 0x221   :  { %v3104_v63 = vadd.f32 %v3103_v49, %v3090_v61 }
 0x222   :  { %v3105_v57 = vpop.f32.mrf.mxu0 }
 0x224   :  { %v3117_v55 = vpop.f32.mrf.mxu2 }
 0x225   :  { %v3118_v2 = vadd.f32 %v3117_v55, %v3104_v63 }
 0x226   :  { %v3091_v35 = vpop.f32.mrf.mxu3 }
 0x227   :  { %v3092_v3 = vadd.f32 %v3091_v35, %v3078_v0 }
 0x229   :  { %v3106_v7 = vadd.f32 %v3105_v57, %v3092_v3 }
 0x22a   :  { %v3159_v62 = vpop.f32.mrf.mxu0 }
 0x22c   :  { %v3119_v58 = vpop.f32.mrf.mxu2 }
 0x22d   :  { %v3120_v10 = vadd.f32 %v3119_v58, %v3106_v7 }
 0x232   :  { %v3161_v8 = vpop.f32.mrf.mxu0 }
 0x23a   :  { %v3131_v1 = vpop.f32.mrf.mxu1 }
 0x23b   :  { %v3132_v4 = vadd.f32 %v3131_v1, %v3118_v2 }
 0x241   :  { %v3187_v13 = vpop.f32.mrf.mxu0 }
 0x242   :  { %v3145_v5 = vpop.f32.mrf.mxu3  ;;  %v3133_v60 = vpop.f32.mrf.mxu1 }
 0x243   :  { %v3146_v54 = vadd.f32 %v3145_v5, %v3132_v4  ;;  %v3134_v37 = vadd.f32 %v3133_v60, %v3120_v10 }
 0x244   :  { %v3173_v14 = vpop.f32.mrf.mxu2 }
 0x245   :  { %v3160_v9 = vadd.f32 %v3159_v62, %v3146_v54  ;;  %v3174_v53 = vadd.f32 %v3173_v14, %v470_v16 }
 0x247   :  { %3268 = vst [vmem:[#allocation8 + $0x30] sm:$0xff] %v3160_v9  ;;  %v3188_v22 = vadd.f32 %v3187_v13, %v3174_v53 }
 0x249   :  { %v3189_v18 = vpop.f32.mrf.mxu0 }
 0x24a   :  { %v3147_v11 = vpop.f32.mrf.mxu3 }
 0x24b   :  { %v3148_v12 = vadd.f32 %v3147_v11, %v3134_v37 }
 0x24c   :  { %v3175_v20 = vpop.f32.mrf.mxu2 }
 0x24d   :  { %v3162_v42 = vadd.f32 %v3161_v8, %v3148_v12  ;;  %v3176_v21 = vadd.f32 %v3175_v20, %v470_v16 }
 0x24f   :  { %3276 = vst [vmem:[#allocation8 + $0x70] sm:$0xff] %v3162_v42  ;;  %v3190_v27 = vadd.f32 %v3189_v18, %v3176_v21 }
 0x263   :  { %v3201_v17 = vpop.f32.mrf.mxu1 }
 0x264   :  { %v3202_v23 = vadd.f32 %v3201_v17, %v3188_v22 }
 0x26b   :  { %v3203_v46 = vpop.f32.mrf.mxu1 }
 0x26c   :  { %v3204_v29 = vadd.f32 %v3203_v46, %v3190_v27 }
 0x26d   :  { %v3243_v19 = vpop.f32.mrf.mxu0 }
 0x26f   :  { %v3215_v50 = vpop.f32.mrf.mxu3 }
 0x270   :  { %v3216_v24 = vadd.f32 %v3215_v50, %v3202_v23 }
 0x271   :  { %v3229_v26 = vpop.f32.mrf.mxu2 }
 0x272   :  { %v3230_v25 = vadd.f32 %v3229_v26, %v3216_v24 }
 0x273   :  { %v3257_v30 = vpop.f32.mrf.mxu1 }
 0x274   :  { %v3244_v28 = vadd.f32 %v3243_v19, %v3230_v25 }
 0x275   :  { %v3245_v39 = vpop.f32.mrf.mxu0 }
 0x276   :  { %v3258_v31 = vadd.f32 %v3257_v30, %v3244_v28 }
 0x277   :  { %v3217_v15 = vpop.f32.mrf.mxu3 }
 0x278   :  { %v3218_v33 = vadd.f32 %v3217_v15, %v3204_v29  ;;  %3269 = vst [vmem:[#allocation8 + $0x38] sm:$0xff] %v3258_v31 }
 0x279   :  { %v3231_v34 = vpop.f32.mrf.mxu2 }
 0x27a   :  { %v3232_v36 = vadd.f32 %v3231_v34, %v3218_v33 }
 0x27b   :  { %v3259_v43 = vpop.f32.mrf.mxu1 }
 0x27c   :  { %v3246_v32 = vadd.f32 %v3245_v39, %v3232_v36 }
 0x27e   :  { %v3260_v40 = vadd.f32 %v3259_v43, %v3246_v32 }
 0x280   :  { %3277 = vst [vmem:[#allocation8 + $0x78] sm:$0xff] %v3260_v40 }
 0x281   :  { %3290 = dma.vmem_to_hbm [thread:$0]  %s3283_s2, 2048, %s3285_s5, [#allocation4], %s5423_s6, %s5423_s6, %s5424_s7  }
 0x282   :  { %5413 = dma.done.wait [#allocation4], 2048  }
 0x283   :  { %5414 = vsyncadd [#allocation4], 4294965248 }
 0x284   :  { %3295 = vsyncpa [#allocation3], 1 }
 0x285   :  { %3296 = vsyncpa [#allocation6], 1 }
 0x286   :  { %3297 = vsyncpa [#allocation4], 1 }

</bundles_post_ra>
